<compile_context>
chip_gen: v6e
topology: v6e:2x2x1
jax: 0.10.0
libtpu: 0.0.40
codegen_flags: <defaults>
</compile_context>

<pallas_src>
import functools
from collections import namedtuple

import jax
import jax.numpy as jnp
from jax.experimental import pallas as pl
from jax.experimental.pallas import tpu as pltpu

LANE = 128                            # output-channel tile (lane width)
VMEM_LIMIT = 48 * 1024 * 1024         # <= 48 MiB so the same kernels fit v7x's 64 MiB VMEM


def _round_up(x, m):
    return (x + m - 1) // m * m


# ------------------------------ Pallas kernels ------------------------------ #

def _tap_matmuls(x_ref, w_ref, offsets, m_rows):
    """sum_t  x[rows + off_t, :] @ w[t]  with f32 accumulation on the MXU."""
    acc = None
    for t, off in enumerate(offsets):
        lhs = x_ref[pl.ds(off, m_rows), :].astype(jnp.bfloat16)   # bf16 MXU feed
        part = jnp.dot(lhs, w_ref[t], preferred_element_type=jnp.float32)
        acc = part if acc is None else acc + part
    return acc


def _conv_kernel(x_ref, w_ref, b_ref, o_ref, *, offsets, m_rows, relu):
    acc = _tap_matmuls(x_ref, w_ref, offsets, m_rows) + b_ref[...]
    if relu:
        acc = jnp.maximum(acc, 0.0)
    o_ref[...] = acc


def _conv_res_kernel(x_ref, w_ref, b_ref, r_ref, o_ref, *, offsets, m_rows, relu):
    # residual add (ResNet BasicBlock) fused into the conv epilogue
    acc = _tap_matmuls(x_ref, w_ref, offsets, m_rows) + b_ref[...] + r_ref[...]
    if relu:
        acc = jnp.maximum(acc, 0.0)
    o_ref[...] = acc


def _pallas_conv(xf, w, b, res, *, offsets, m_rows, relu):
    """xf: (R, Cin) f32 guard-padded flat activation, w: (T, Cin, Cpad) bf16,
    b: (1, Cpad) f32, res: optional (M, Cpad) f32.  Returns (M, Cpad) f32."""
    rows, cin = xf.shape
    taps, _, cpad = w.shape
    n_tiles = cpad // LANE

    in_specs = [
        pl.BlockSpec((rows, cin), lambda j: (0, 0)),          # activation stays resident
        pl.BlockSpec((taps, cin, LANE), lambda j: (0, 0, j)),  # weight tile, double-buffered
        pl.BlockSpec((1, LANE), lambda j: (0, j)),
    ]
    args = [xf, w, b]
    if res is not None:
        in_specs.append(pl.BlockSpec((m_rows, LANE), lambda j: (0, j)))
        args.append(res)
        kernel = functools.partial(_conv_res_kernel, offsets=offsets,
                                   m_rows=m_rows, relu=relu)
    else:
        kernel = functools.partial(_conv_kernel, offsets=offsets,
                                   m_rows=m_rows, relu=relu)

    return pl.pallas_call(
        kernel,
        out_shape=jax.ShapeDtypeStruct((m_rows, cpad), jnp.float32),
        grid=(n_tiles,),
        in_specs=in_specs,
        out_specs=pl.BlockSpec((m_rows, LANE), lambda j: (0, j)),
        compiler_params=pltpu.CompilerParams(
            dimension_semantics=("parallel",),        # Cout tiles shard across v7x TCs
            vmem_limit_bytes=VMEM_LIMIT,
        ),
    )(*args)


# ------------------------------- conv wrapper ------------------------------- #

ConvSpec = namedtuple("ConvSpec", "name cin cout k stride relu bias")


def conv_apply(spec, p, x, res=None):
    """x: (N, H, W, Cin) f32 NHWC -> (N, Ho, Wo, Cout) f32.  PyTorch Conv2d semantics
    (SAME zero pad = k//2), folded BN + bias + ReLU + optional residual fused."""
    n, h, w, cin = x.shape
    assert cin == spec.cin, (spec.name, cin, spec.cin)
    k, s, cout = spec.k, spec.stride, spec.cout
    cpad = p["w"].shape[-1]
    pad = k // 2

    if k == 1 and s == 2:                      # ResNet 1x1 downsample: cheap subsample
        x = x[:, ::2, ::2, :]
        n, h, w, cin = x.shape
        s = 1

    hp, wp = h + 2 * pad, w + 2 * pad
    xsp = jnp.pad(x, ((0, 0), (pad, pad), (pad, pad), (0, 0))) if pad else x
    m_rows = n * hp * wp
    guard = pad * wp + pad
    xf = xsp.reshape(m_rows, cin)
    if guard:
        xf = jnp.pad(xf, ((guard, guard), (0, 0)))
    # one constant row offset per (dy, dx) tap on the flattened padded grid
    offsets = tuple(guard + dy * wp + dx
                    for dy in range(-pad, pad + 1) for dx in range(-pad, pad + 1))

    res_f = None
    if res is not None:
        rp = jnp.pad(res, ((0, 0), (pad, pad), (pad, pad), (0, cpad - cout)))
        res_f = rp.reshape(m_rows, cpad)

    out = _pallas_conv(xf, p["w"], p["b"], res_f,
                       offsets=offsets, m_rows=m_rows, relu=spec.relu)
    out = out.reshape(n, hp, wp, cpad)
    if pad:
        out = out[:, pad:pad + h, pad:pad + w, :]   # drop padded-grid rows/cols
    out = out[..., :cout]                           # drop lane padding
    if s == 2:                                      # strided 3x3/7x7: subsample full-res result
        out = out[:, ::2, ::2, :]
    return out


# ------------------------------- XLA glue ops ------------------------------- #

def maxpool3x3_s2(x):
    # TODO(synk): ResNet stem maxpool kept as XLA reduce_window glue (could be fused
    # into the stem conv epilogue).
    return jax.lax.reduce_window(x, -jnp.inf, jax.lax.max,
                                 (1, 3, 3, 1), (1, 2, 2, 1),
                                 [(0, 0), (1, 1), (1, 1), (0, 0)])


def upsample2x_nearest(x):
    # TODO(synk): nearest 2x upsample (F.interpolate, mode="nearest") kept as XLA glue.
    return jnp.repeat(jnp.repeat(x, 2, axis=1), 2, axis=2)


# ------------------------------- architecture ------------------------------- #

def build_arch(in_channels=4, classes=4):
    specs = {}

    def add(name, cin, cout, k, stride=1, relu=False, bias=False):
        specs[name] = ConvSpec(name, cin, cout, k, stride, relu, bias)

    # ResNet-34 encoder
    add("stem", in_channels, 64, 7, stride=2, relu=True)
    cin = 64
    for si, (nblocks, cout, first_stride) in enumerate(
            [(3, 64, 1), (4, 128, 2), (6, 256, 2), (3, 512, 2)]):
        for b in range(nblocks):
            s = first_stride if b == 0 else 1
            pre = f"enc{si}_b{b}_"
            add(pre + "conv1", cin, cout, 3, stride=s, relu=True)
            add(pre + "conv2", cout, cout, 3, stride=1, relu=True)
            if s != 1 or cin != cout:
                add(pre + "down", cin, cout, 1, stride=s, relu=False)
            cin = cout

    # U-Net decoder (smp decoder_channels = (256, 128, 64, 32, 16))
    dec_in = [512 + 256, 256 + 128, 128 + 64, 64 + 64, 32]
    dec_out = [256, 128, 64, 32, 16]
    for i, (ci, co) in enumerate(zip(dec_in, dec_out)):
        add(f"dec{i}_conv1", ci, co, 3, relu=True)
        add(f"dec{i}_conv2", co, co, 3, relu=True)

    add("seg_head", 16, classes, 3, relu=False, bias=True)
    add("lastlayer", classes, 300, 1, relu=False, bias=True)
    return specs


def _conv_layer(key, spec):
    k, cin, cout = spec.k, spec.cin, spec.cout
    cpad = _round_up(cout, LANE)
    kw, kb = jax.random.split(key)
    fan_in = cin * k * k
    w = jax.random.normal(kw, (k, k, cin, cout), jnp.float32) * jnp.sqrt(2.0 / fan_in)
    if spec.bias:
        b = 0.01 * jax.random.normal(kb, (cout,), jnp.float32)
    else:
        # Conv2d(bias=False) + BatchNorm2d: fold inference-mode BN into (w, b).
        # PyTorch init: gamma=1, beta=0, running_mean=0, running_var=1, eps=1e-5.
        # TODO(synk): train-mode (batch-statistic) BatchNorm is not replicated.
        eps = 1e-5
        gamma = jnp.ones((cout,), jnp.float32)
        beta = jnp.zeros((cout,), jnp.float32)
        mean = jnp.zeros((cout,), jnp.float32)
        var = jnp.ones((cout,), jnp.float32)
        scale = gamma / jnp.sqrt(var + eps)
        w = w * scale[None, None, None, :]
        b = beta - mean * scale
    w = jnp.pad(w, ((0, 0), (0, 0), (0, 0), (0, cpad - cout)))
    b = jnp.pad(b, ((0, cpad - cout),))
    return {"w": w.reshape(k * k, cin, cpad).astype(jnp.bfloat16),   # bf16 weight stream
            "b": b.reshape(1, cpad).astype(jnp.float32)}


def init_params(key, arch):
    names = sorted(arch.keys())
    keys = jax.random.split(key, len(names))
    return {name: _conv_layer(kk, arch[name]) for name, kk in zip(names, keys)}


# --------------------------------- forward ---------------------------------- #

def forward(arch, params, x_nchw, state="train", active="sigmoid"):
    x = jnp.transpose(x_nchw, (0, 2, 3, 1)).astype(jnp.float32)    # NCHW -> NHWC

    # ----- ResNet-34 encoder (smp feature stages) -----
    feats = [x]                                                     # stage 0 (identity)
    x = conv_apply(arch["stem"], params["stem"], x)                 # /2, 64ch
    feats.append(x)                                                 # stage 1
    x = maxpool3x3_s2(x)                                            # /4
    for si, nblocks in enumerate((3, 4, 6, 3)):
        for b in range(nblocks):
            pre = f"enc{si}_b{b}_"
            identity = x
            if pre + "down" in arch:
                identity = conv_apply(arch[pre + "down"], params[pre + "down"], x)
            h1 = conv_apply(arch[pre + "conv1"], params[pre + "conv1"], x)
            x = conv_apply(arch[pre + "conv2"], params[pre + "conv2"], h1, res=identity)
        feats.append(x)                                             # stages 2..5

    # ----- U-Net decoder -----
    skips = [feats[4], feats[3], feats[2], feats[1], None]
    y = feats[5]
    for i in range(5):
        y = upsample2x_nearest(y)
        if skips[i] is not None:
            y = jnp.concatenate([y, skips[i]], axis=-1)
        y = conv_apply(arch[f"dec{i}_conv1"], params[f"dec{i}_conv1"], y)
        y = conv_apply(arch[f"dec{i}_conv2"], params[f"dec{i}_conv2"], y)

    y = conv_apply(arch["seg_head"], params["seg_head"], y)         # (N, H, W, classes)

    logits = jnp.transpose(y, (0, 3, 1, 2))                          # NCHW (PyTorch `x`)
    # TODO(synk): sigmoid/softmax kept as XLA glue (tiny output-level elementwise).
    if active == "softmax":
        result = jax.nn.softmax(logits, axis=1)
    else:
        result = jax.nn.sigmoid(logits)

    if state == "train":
        mid = conv_apply(arch["lastlayer"], params["lastlayer"], y)  # 1x1, 4 -> 300
        mid_x = jnp.transpose(mid, (0, 3, 1, 2))
        return result, logits, mid_x
    return result, logits


# ----------------------------------- main ------------------------------------ #

if __name__ == "__main__":
    key = jax.random.PRNGKey(0)
    kp, kx, kt = jax.random.split(key, 3)

    arch = build_arch(in_channels=4, classes=4)
    params = init_params(kp, arch)

    # --- sanity gates: Pallas tap-conv vs lax.conv on representative layers ---
    def _ref_conv(spec, p, xt, stride):
        k, cout = spec.k, spec.cout
        w = p["w"].astype(jnp.float32).reshape(k, k, spec.cin, -1)[..., :cout]
        pad = k // 2
        y = jax.lax.conv_general_dilated(
            xt, w, (stride, stride), [(pad, pad), (pad, pad)],
            dimension_numbers=("NHWC", "HWIO", "NHWC"))
        y = y + p["b"][0, :cout]
        return jnp.maximum(y, 0.0) if spec.relu else y

    # 3x3 stride-1 conv
    xt = jax.random.normal(kt, (2, 8, 8, 64), jnp.float32)
    xt = xt.astype(jnp.bfloat16).astype(jnp.float32)
    got = conv_apply(arch["enc0_b0_conv1"], params["enc0_b0_conv1"], xt)
    ref = _ref_conv(arch["enc0_b0_conv1"], params["enc0_b0_conv1"], xt, 1)
    assert jnp.allclose(got, ref, atol=1e-2, rtol=1e-2), "3x3 conv mismatch"

    # 7x7 stride-2 stem conv
    xt2 = jax.random.normal(kx, (2, 32, 32, 4), jnp.float32)
    xt2 = xt2.astype(jnp.bfloat16).astype(jnp.float32)
    got2 = conv_apply(arch["stem"], params["stem"], xt2)
    ref2 = _ref_conv(arch["stem"], params["stem"], xt2, 2)
    assert jnp.allclose(got2, ref2, atol=1e-2, rtol=1e-2), "stem conv mismatch"

    # --- full forward (input spatial must be divisible by 32 for the resnet34 encoder) ---
    x = jax.random.normal(kx, (2, 4, 32, 32), jnp.float32)
    fwd = jax.jit(functools.partial(forward, arch))
    result, logits, mid_x = fwd(params, x)
    jax.block_until_ready((result, logits, mid_x))

    assert result.shape == (2, 4, 32, 32)
    assert logits.shape == (2, 4, 32, 32)
    assert mid_x.shape == (2, 300, 32, 32)
    print("KERNEL_OK")
</pallas_src>

<mosaic_0001>
module attributes {stable_mosaic.version = 11 : i64} {
  func.func @_conv_kernel(%arg0: i32, %arg1: memref<222x64xf32, #tpu.memory_space<vmem>>, %arg2: memref<9x64x128xbf16, #tpu.memory_space<vmem>>, %arg3: memref<1x128xf32, #tpu.memory_space<vmem>>, %arg4: memref<200x128xf32, #tpu.memory_space<vmem>>) attributes {dimension_semantics = [#tpu.dimension_semantics<parallel>], iteration_bounds = array<i64: 1>, scalar_prefetch = 0 : i64, scratch_operands = 0 : i64, tpu.core_type = #tpu.core_type<tc>, window_params = [{pipeline_mode = #tpu.pipeline_mode<synchronous>, transform_indices = @transform_0, window_bounds = array<i64: 222, 64>}, {transform_indices = @transform_1, window_bounds = array<i64: 9, 64, 128>}, {transform_indices = @transform_2, window_bounds = array<i64: 1, 128>}, {transform_indices = @transform_3, window_bounds = array<i64: 200, 128>}]} {
    %c0 = arith.constant 0 : index
    %c0_0 = arith.constant 0 : index
    %0 = vector.load %arg1[%c0, %c0_0] : memref<222x64xf32, #tpu.memory_space<vmem>>, vector<200x64xf32>
    %1 = arith.truncf %0 : vector<200x64xf32> to vector<200x64xbf16>
    %c0_1 = arith.constant 0 : index
    %c0_2 = arith.constant 0 : index
    %c0_3 = arith.constant 0 : index
    %2 = vector.load %arg2[%c0_1, %c0_2, %c0_3] : memref<9x64x128xbf16, #tpu.memory_space<vmem>>, vector<1x64x128xbf16>
    %3 = vector.shape_cast %2 : vector<1x64x128xbf16> to vector<64x128xbf16>
    %cst = arith.constant dense<0.000000e+00> : vector<200x128xf32>
    %4 = tpu.matmul %1, %3, %cst {dimension_numbers = #tpu.dot_dimension_numbers<[1], [0], [0], [1], [0, 0, 1, 1], [], []>} : vector<200x64xbf16>, vector<64x128xbf16>, vector<200x128xf32> -> vector<200x128xf32>
    %c1 = arith.constant 1 : index
    %c0_4 = arith.constant 0 : index
    %5 = vector.load %arg1[%c1, %c0_4] : memref<222x64xf32, #tpu.memory_space<vmem>>, vector<200x64xf32>
    %6 = arith.truncf %5 : vector<200x64xf32> to vector<200x64xbf16>
    %c1_5 = arith.constant 1 : index
    %c0_6 = arith.constant 0 : index
    %c0_7 = arith.constant 0 : index
    %7 = vector.load %arg2[%c1_5, %c0_6, %c0_7] : memref<9x64x128xbf16, #tpu.memory_space<vmem>>, vector<1x64x128xbf16>
    %8 = vector.shape_cast %7 : vector<1x64x128xbf16> to vector<64x128xbf16>
    %cst_8 = arith.constant dense<0.000000e+00> : vector<200x128xf32>
    %9 = tpu.matmul %6, %8, %cst_8 {dimension_numbers = #tpu.dot_dimension_numbers<[1], [0], [0], [1], [0, 0, 1, 1], [], []>} : vector<200x64xbf16>, vector<64x128xbf16>, vector<200x128xf32> -> vector<200x128xf32>
    %10 = arith.addf %4, %9 : vector<200x128xf32>
    %c2 = arith.constant 2 : index
    %c0_9 = arith.constant 0 : index
    %11 = vector.load %arg1[%c2, %c0_9] : memref<222x64xf32, #tpu.memory_space<vmem>>, vector<200x64xf32>
    %12 = arith.truncf %11 : vector<200x64xf32> to vector<200x64xbf16>
    %c2_10 = arith.constant 2 : index
    %c0_11 = arith.constant 0 : index
    %c0_12 = arith.constant 0 : index
    %13 = vector.load %arg2[%c2_10, %c0_11, %c0_12] : memref<9x64x128xbf16, #tpu.memory_space<vmem>>, vector<1x64x128xbf16>
    %14 = vector.shape_cast %13 : vector<1x64x128xbf16> to vector<64x128xbf16>
    %cst_13 = arith.constant dense<0.000000e+00> : vector<200x128xf32>
    %15 = tpu.matmul %12, %14, %cst_13 {dimension_numbers = #tpu.dot_dimension_numbers<[1], [0], [0], [1], [0, 0, 1, 1], [], []>} : vector<200x64xbf16>, vector<64x128xbf16>, vector<200x128xf32> -> vector<200x128xf32>
    %16 = arith.addf %10, %15 : vector<200x128xf32>
    %c10 = arith.constant 10 : index
    %c0_14 = arith.constant 0 : index
    %17 = vector.load %arg1[%c10, %c0_14] : memref<222x64xf32, #tpu.memory_space<vmem>>, vector<200x64xf32>
    %18 = arith.truncf %17 : vector<200x64xf32> to vector<200x64xbf16>
    %c3 = arith.constant 3 : index
    %c0_15 = arith.constant 0 : index
    %c0_16 = arith.constant 0 : index
    %19 = vector.load %arg2[%c3, %c0_15, %c0_16] : memref<9x64x128xbf16, #tpu.memory_space<vmem>>, vector<1x64x128xbf16>
    %20 = vector.shape_cast %19 : vector<1x64x128xbf16> to vector<64x128xbf16>
    %cst_17 = arith.constant dense<0.000000e+00> : vector<200x128xf32>
    %21 = tpu.matmul %18, %20, %cst_17 {dimension_numbers = #tpu.dot_dimension_numbers<[1], [0], [0], [1], [0, 0, 1, 1], [], []>} : vector<200x64xbf16>, vector<64x128xbf16>, vector<200x128xf32> -> vector<200x128xf32>
    %22 = arith.addf %16, %21 : vector<200x128xf32>
    %c11 = arith.constant 11 : index
    %c0_18 = arith.constant 0 : index
    %23 = vector.load %arg1[%c11, %c0_18] : memref<222x64xf32, #tpu.memory_space<vmem>>, vector<200x64xf32>
    %24 = arith.truncf %23 : vector<200x64xf32> to vector<200x64xbf16>
    %c4 = arith.constant 4 : index
    %c0_19 = arith.constant 0 : index
    %c0_20 = arith.constant 0 : index
    %25 = vector.load %arg2[%c4, %c0_19, %c0_20] : memref<9x64x128xbf16, #tpu.memory_space<vmem>>, vector<1x64x128xbf16>
    %26 = vector.shape_cast %25 : vector<1x64x128xbf16> to vector<64x128xbf16>
    %cst_21 = arith.constant dense<0.000000e+00> : vector<200x128xf32>
    %27 = tpu.matmul %24, %26, %cst_21 {dimension_numbers = #tpu.dot_dimension_numbers<[1], [0], [0], [1], [0, 0, 1, 1], [], []>} : vector<200x64xbf16>, vector<64x128xbf16>, vector<200x128xf32> -> vector<200x128xf32>
    %28 = arith.addf %22, %27 : vector<200x128xf32>
    %c12 = arith.constant 12 : index
    %c0_22 = arith.constant 0 : index
    %29 = vector.load %arg1[%c12, %c0_22] : memref<222x64xf32, #tpu.memory_space<vmem>>, vector<200x64xf32>
    %30 = arith.truncf %29 : vector<200x64xf32> to vector<200x64xbf16>
    %c5 = arith.constant 5 : index
    %c0_23 = arith.constant 0 : index
    %c0_24 = arith.constant 0 : index
    %31 = vector.load %arg2[%c5, %c0_23, %c0_24] : memref<9x64x128xbf16, #tpu.memory_space<vmem>>, vector<1x64x128xbf16>
    %32 = vector.shape_cast %31 : vector<1x64x128xbf16> to vector<64x128xbf16>
    %cst_25 = arith.constant dense<0.000000e+00> : vector<200x128xf32>
    %33 = tpu.matmul %30, %32, %cst_25 {dimension_numbers = #tpu.dot_dimension_numbers<[1], [0], [0], [1], [0, 0, 1, 1], [], []>} : vector<200x64xbf16>, vector<64x128xbf16>, vector<200x128xf32> -> vector<200x128xf32>
    %34 = arith.addf %28, %33 : vector<200x128xf32>
    %c20 = arith.constant 20 : index
    %c0_26 = arith.constant 0 : index
    %35 = vector.load %arg1[%c20, %c0_26] : memref<222x64xf32, #tpu.memory_space<vmem>>, vector<200x64xf32>
    %36 = arith.truncf %35 : vector<200x64xf32> to vector<200x64xbf16>
    %c6 = arith.constant 6 : index
    %c0_27 = arith.constant 0 : index
    %c0_28 = arith.constant 0 : index
    %37 = vector.load %arg2[%c6, %c0_27, %c0_28] : memref<9x64x128xbf16, #tpu.memory_space<vmem>>, vector<1x64x128xbf16>
    %38 = vector.shape_cast %37 : vector<1x64x128xbf16> to vector<64x128xbf16>
    %cst_29 = arith.constant dense<0.000000e+00> : vector<200x128xf32>
    %39 = tpu.matmul %36, %38, %cst_29 {dimension_numbers = #tpu.dot_dimension_numbers<[1], [0], [0], [1], [0, 0, 1, 1], [], []>} : vector<200x64xbf16>, vector<64x128xbf16>, vector<200x128xf32> -> vector<200x128xf32>
    %40 = arith.addf %34, %39 : vector<200x128xf32>
    %c21 = arith.constant 21 : index
    %c0_30 = arith.constant 0 : index
    %41 = vector.load %arg1[%c21, %c0_30] : memref<222x64xf32, #tpu.memory_space<vmem>>, vector<200x64xf32>
    %42 = arith.truncf %41 : vector<200x64xf32> to vector<200x64xbf16>
    %c7 = arith.constant 7 : index
    %c0_31 = arith.constant 0 : index
    %c0_32 = arith.constant 0 : index
    %43 = vector.load %arg2[%c7, %c0_31, %c0_32] : memref<9x64x128xbf16, #tpu.memory_space<vmem>>, vector<1x64x128xbf16>
    %44 = vector.shape_cast %43 : vector<1x64x128xbf16> to vector<64x128xbf16>
    %cst_33 = arith.constant dense<0.000000e+00> : vector<200x128xf32>
    %45 = tpu.matmul %42, %44, %cst_33 {dimension_numbers = #tpu.dot_dimension_numbers<[1], [0], [0], [1], [0, 0, 1, 1], [], []>} : vector<200x64xbf16>, vector<64x128xbf16>, vector<200x128xf32> -> vector<200x128xf32>
    %46 = arith.addf %40, %45 : vector<200x128xf32>
    %c22 = arith.constant 22 : index
    %c0_34 = arith.constant 0 : index
    %47 = vector.load %arg1[%c22, %c0_34] : memref<222x64xf32, #tpu.memory_space<vmem>>, vector<200x64xf32>
    %48 = arith.truncf %47 : vector<200x64xf32> to vector<200x64xbf16>
    %c8 = arith.constant 8 : index
    %c0_35 = arith.constant 0 : index
    %c0_36 = arith.constant 0 : index
    %49 = vector.load %arg2[%c8, %c0_35, %c0_36] : memref<9x64x128xbf16, #tpu.memory_space<vmem>>, vector<1x64x128xbf16>
    %50 = vector.shape_cast %49 : vector<1x64x128xbf16> to vector<64x128xbf16>
    %cst_37 = arith.constant dense<0.000000e+00> : vector<200x128xf32>
    %51 = tpu.matmul %48, %50, %cst_37 {dimension_numbers = #tpu.dot_dimension_numbers<[1], [0], [0], [1], [0, 0, 1, 1], [], []>} : vector<200x64xbf16>, vector<64x128xbf16>, vector<200x128xf32> -> vector<200x128xf32>
    %52 = arith.addf %46, %51 : vector<200x128xf32>
    %c0_38 = arith.constant 0 : index
    %c0_39 = arith.constant 0 : index
    %53 = vector.load %arg3[%c0_38, %c0_39] : memref<1x128xf32, #tpu.memory_space<vmem>>, vector<1x128xf32>
    %54 = vector.broadcast %53 : vector<1x128xf32> to vector<200x128xf32>
    %55 = arith.addf %52, %54 : vector<200x128xf32>
    %cst_40 = arith.constant 0.000000e+00 : f32
    %56 = vector.broadcast %cst_40 : f32 to vector<200x128xf32>
    %57 = arith.maximumf %55, %56 : vector<200x128xf32>
    %c0_41 = arith.constant 0 : index
    %c0_42 = arith.constant 0 : index
    %58 = vector.load %arg4[%c0_41, %c0_42] : memref<200x128xf32, #tpu.memory_space<vmem>>, vector<200x128xf32>
    tpu.vector_store %arg4[%c0_41, %c0_42], %57 {strides = array<i32>} : memref<200x128xf32, #tpu.memory_space<vmem>>, vector<200x128xf32>,
    return
  }
  func.func @transform_0(%arg0: i32) -> (i32, i32) {
    %c0_i32 = arith.constant 0 : i32
    %c0_i32_0 = arith.constant 0 : i32
    %c0_i32_1 = arith.constant 0 : i32
    return %c0_i32, %c0_i32_0 : i32, i32
  }
  func.func @transform_1(%arg0: i32) -> (i32, i32, i32) {
    %c0_i32 = arith.constant 0 : i32
    %c0_i32_0 = arith.constant 0 : i32
    %c0_i32_1 = arith.constant 0 : i32
    return %c0_i32, %c0_i32_0, %arg0 : i32, i32, i32
  }
  func.func @transform_2(%arg0: i32) -> (i32, i32) {
    %c0_i32 = arith.constant 0 : i32
    %c0_i32_0 = arith.constant 0 : i32
    return %c0_i32, %arg0 : i32, i32
  }
  func.func @transform_3(%arg0: i32) -> (i32, i32) {
    %c0_i32 = arith.constant 0 : i32
    %c0_i32_0 = arith.constant 0 : i32
    return %c0_i32, %arg0 : i32, i32
  }
}

</mosaic_0001>

<bundles_post_ra>
// kernel: tpu_custom_call.1
= control target key start
LH: loop header
LB: loop body
LE: loop exit
PB: predicated region body
PF: predicated region fallthrough
CT: control target
= control target key end

     0   :  { %v3485_v1 = vmov 0.0   ;;  %vm3486_vm0 = vmmov 0   ;;  %vm133_vm1 = vcmask 523264   ;;  %s4997_s0 = inlined_call_operand.vmem [shape: f32[222,64], index: 0, kind: input, shape index: {}]   ;;  %s4998_s1 = inlined_call_operand.vmem [shape: bf16[9,64,128], index: 1, kind: input, shape index: {}]   ;;  %s4999_s2 = inlined_call_operand.vmem [shape: f32[1,128], index: 2, kind: input, shape index: {}]   ;;  %s5000_s3 = inlined_call_operand.hbm [shape: f32[200,128], index: 3, kind: output, shape index: {}]  }
   0x1   :  { %v3427_v0 = vld [vmem:[%s4998_s1 + $0x38] sm:$0xff]   ;;  %2874 = vmatprep.subr.bf16.mxu0 %v3485_v1  ;;  %3414 = vmatprep.subr.bf16.mxu1 %v3485_v1  ;;  %v3428_v2 = vld [vmem:[%s4998_s1 + $0x30] sm:$0xff]   ;;  %v3429_v3 = vld [vmem:[%s4998_s1 + $0x28] sm:$0xff]  }
   0x2   :  { %2875 = vmatpush3.bf16.msra.mxu0 %v3427_v0  ;;  %3418 = vmatpush3.bf16.msra.mxu1 %v3427_v0  ;;  %v3430_v4 = vld [vmem:[%s4998_s1 + $0x20] sm:$0xff]   ;;  %v63_v6 = vld [vmem:[%s4997_s0 + $0x9] sm:$0xff]  ;;  %v76_v7 = vld [vmem:[%s4997_s0 + $0x71] sm:$0xff] }
   0x3   :  { %2876 = vmatprep.subr.bf16.mxu0 %v3485_v1  ;;  %3415 = vmatprep.subr.bf16.mxu1 %v3485_v1  ;;  %v62_v5 = vld [vmem:[%s4997_s0 + $0x1] sm:$0xff]  ;;  %v77_v8 = vld [vmem:[%s4997_s0 + $0x79] sm:$0xff]  ;;  %v64_v13 = vld [vmem:[%s4997_s0 + $0x11] sm:$0xff] }
   0x4   :  { %2882 = vmatprep.mubr.msk.bf16.mxu0 %vm3486_vm0, %v3485_v1  ;;  %2910 = vmatprep.mubr.msk.bf16.mxu1 %vm3486_vm0, %v3485_v1  ;;  %v87_v9 = vpack.c.bf16 %v63_v6, %v62_v5  ;;  %v94_v10 = vpack.c.bf16 %v77_v8, %v76_v7  ;;  %v3431_v11 = vld [vmem:[%s4998_s1 + $0x58] sm:$0xff]   ;;  %v78_v15 = vld [vmem:[%s4997_s0 + $0x81] sm:$0xff]  ;;  %v79_v16 = vld [vmem:[%s4997_s0 + $0x89] sm:$0xff] }
   0x5   :  { %v3432_v12 = vld [vmem:[%s4998_s1 + $0x18] sm:$0xff]   ;;  %v3433_v17 = vld [vmem:[%s4998_s1 + $0x50] sm:$0xff]   ;;  %v95_v20 = vpack.c.bf16 %v79_v16, %v78_v15  ;;  %v3435_v21 = vld [vmem:[%s4998_s1 + $0x48] sm:$0xff]  }
   0x6   :  { %2877 = vmatpush3.bf16.msra.mxu0 %v3428_v2  ;;  %3419 = vmatpush3.bf16.msra.mxu1 %v3428_v2  ;;  %v65_v14 = vld [vmem:[%s4997_s0 + $0x19] sm:$0xff]  ;;  %v3434_v18 = vld [vmem:[%s4998_s1 + $0x10] sm:$0xff]   ;;  %v3436_v22 = vld [vmem:[%s4998_s1 + $0x8] sm:$0xff]  }
   0x7   :  { %2878 = vmatprep.subr.bf16.mxu0 %v3485_v1  ;;  %3416 = vmatprep.subr.bf16.mxu1 %v3485_v1  ;;  %v88_v19 = vpack.c.bf16 %v65_v14, %v64_v13  ;;  %v66_v23 = vld [vmem:[%s4997_s0 + $0x21] sm:$0xff]  ;;  %v67_v24 = vld [vmem:[%s4997_s0 + $0x29] sm:$0xff]  ;;  %v80_v25 = vld [vmem:[%s4997_s0 + $0x91] sm:$0xff] }
   0x8   :  { %v81_v26 = vld [vmem:[%s4997_s0 + $0x99] sm:$0xff]  ;;  %v89_v29 = vpack.c.bf16 %v67_v24, %v66_v23  ;;  %v68_v31 = vld [vmem:[%s4997_s0 + $0x31] sm:$0xff]  ;;  %v82_v33 = vld [vmem:[%s4997_s0 + $0xa1] sm:$0xff] }
   0x9   :  { %v3437_v27 = vld [vmem:[%s4998_s1] sm:$0xff]   ;;  %v96_v30 = vpack.c.bf16 %v81_v26, %v80_v25  ;;  %v83_v34 = vld [vmem:[%s4997_s0 + $0xa9] sm:$0xff]  ;;  %v3642_v38 = vld [vmem:[%s4997_s0 + $0x12] sm:$0xff] }
   0xa   :  { %2879 = vmatpush3.bf16.msra.mxu0 %v3429_v3  ;;  %3420 = vmatpush3.bf16.msra.mxu1 %v3429_v3  ;;  %v3438_v28 = vld [vmem:[%s4998_s1 + $0x40] sm:$0xff]   ;;  %v97_v36 = vpack.c.bf16 %v83_v34, %v82_v33  ;;  %v3637_v37 = vld [vmem:[%s4997_s0 + $0xa] sm:$0xff]  ;;  %v3695_v53 = vld [vmem:[%s4997_s0 + $0x32] sm:$0xff] }
   0xb   :  { %2880 = vmatprep.subr.bf16.mxu0 %v3485_v1  ;;  %3417 = vmatprep.subr.bf16.mxu1 %v3485_v1  ;;  %v69_v32 = vld [vmem:[%s4997_s0 + $0x39] sm:$0xff]  ;;  %v804_v39 = vpack.c.bf16 %v3642_v38, %v3637_v37  ;;  %v70_v40 = vld [vmem:[%s4997_s0 + $0x41] sm:$0xff]  ;;  %v71_v41 = vld [vmem:[%s4997_s0 + $0x49] sm:$0xff] }
   0xc   :  { %v90_v35 = vpack.c.bf16 %v69_v32, %v68_v31  ;;  %v84_v42 = vld [vmem:[%s4997_s0 + $0xb1] sm:$0xff]  ;;  %v85_v43 = vld [vmem:[%s4997_s0 + $0xb9] sm:$0xff]  ;;  %v3672_v45 = vld [vmem:[%s4997_s0 + $0x22] sm:$0xff]  ;;  %v91_v47 = vpack.c.bf16 %v71_v41, %v70_v40 }
   0xd   :  { %v3667_v44 = vld [vmem:[%s4997_s0 + $0x1a] sm:$0xff]  ;;  %v98_v48 = vpack.c.bf16 %v85_v43, %v84_v42  ;;  %v72_v49 = vld [vmem:[%s4997_s0 + $0x51] sm:$0xff]  ;;  %v3711_v58 = vld [vmem:[%s4997_s0 + $0x42] sm:$0xff] }
   0xe   :  { %2881 = vmatpush3.bf16.msra.mxu0 %v3430_v4  ;;  %3421 = vmatpush3.bf16.msra.mxu1 %v3430_v4  ;;  %v805_v46 = vpack.c.bf16 %v3672_v45, %v3667_v44  ;;  %v73_v50 = vld [vmem:[%s4997_s0 + $0x59] sm:$0xff]  ;;  %v86_v51 = vld [vmem:[%s4997_s0 + $0xc1] sm:$0xff]  ;;  %v3688_v52 = vld [vmem:[%s4997_s0 + $0x2a] sm:$0xff] }
   0xf   :  { %2994 = vmatprep.subr.bf16.mxu0 %v3485_v1  ;;  %2934 = vmatprep.subr.bf16.mxu1 %v3485_v1  ;;  %v806_v54 = vpack.c.bf16 %v3695_v53, %v3688_v52  ;;  %v92_v55 = vpack.c.bf16 %v73_v50, %v72_v49  ;;  %v99_v56 = vpack.c.bf16 %v86_v51, %v86_v51  ;;  %v3706_v57 = vld [vmem:[%s4997_s0 + $0x3a] sm:$0xff] }
  0x10   :  { %v74_v59 = vld [vmem:[%s4997_s0 + $0x61] sm:$0xff] }
  0x11   :  { %2883 = vmatmul.mubr.msk.bf16.vlgmr.msra.gmra.mxu0 %vm133_vm1, %v87_v9  ;;  %2911 = vmatmul.mubr.msk.bf16.vlgmr.msra.gmra.mxu1 %vm133_vm1, %v94_v10 }
  0x12   :  { %2995 = vmatpush3.bf16.msra.mxu0 %v3431_v11  ;;  %2886 = vmatprep.mubr.msk.bf16.mxu0 %vm3486_vm0, %v3485_v1 }
  0x13   :  { %2914 = vmatprep.mubr.msk.bf16.mxu1 %vm3486_vm0, %v3485_v1  ;;  %2935 = vmatpush3.bf16.msra.mxu1 %v3432_v12 }
  0x14   :  { %2996 = vmatprep.subr.bf16.mxu0 %v3485_v1  ;;  %2936 = vmatprep.subr.bf16.mxu1 %v3485_v1 }
  0x16   :  { %2997 = vmatpush3.bf16.msra.mxu0 %v3433_v17 }
  0x17   :  { %2937 = vmatpush3.bf16.msra.mxu1 %v3434_v18  ;;  %2998 = vmatprep.subr.bf16.mxu0 %v3485_v1 }
  0x18   :  { %2938 = vmatprep.subr.bf16.mxu1 %v3485_v1 }
  0x19   :  { %2887 = vmatmul.mubr.msk.bf16.gmra.mxu0 %vm133_vm1, %v88_v19  ;;  %2915 = vmatmul.mubr.msk.bf16.gmra.mxu1 %vm133_vm1, %v95_v20 }
  0x1a   :  { %2890 = vmatprep.mubr.msk.bf16.mxu0 %vm3486_vm0, %v3485_v1  ;;  %2918 = vmatprep.mubr.msk.bf16.mxu1 %vm3486_vm0, %v3485_v1 }
  0x1b   :  { %2999 = vmatpush3.bf16.msra.mxu0 %v3435_v21  ;;  %2939 = vmatpush3.bf16.msra.mxu1 %v3436_v22 }
  0x1c   :  { %2940 = vmatprep.subr.bf16.mxu1 %v3485_v1  ;;  %3000 = vmatprep.subr.bf16.mxu0 %v3485_v1 }
  0x1f   :  { %2941 = vmatpush3.bf16.msra.mxu1 %v3437_v27  ;;  %3001 = vmatpush3.bf16.msra.mxu0 %v3438_v28 }
  0x20   :  { %3054 = vmatprep.subr.bf16.mxu1 %v3485_v1  ;;  %3114 = vmatprep.subr.bf16.mxu0 %v3485_v1 }
  0x21   :  { %2891 = vmatmul.mubr.msk.bf16.gmra.mxu0 %vm133_vm1, %v89_v29  ;;  %2919 = vmatmul.mubr.msk.bf16.gmra.mxu1 %vm133_vm1, %v96_v30 }
  0x22   :  { %2894 = vmatprep.mubr.msk.bf16.mxu0 %vm3486_vm0, %v3485_v1  ;;  %2922 = vmatprep.mubr.msk.bf16.mxu1 %vm3486_vm0, %v3485_v1 }
  0x29   :  { %2895 = vmatmul.mubr.msk.bf16.gmra.mxu0 %vm133_vm1, %v90_v35  ;;  %2923 = vmatmul.mubr.msk.bf16.gmra.mxu1 %vm133_vm1, %v97_v36 }
  0x2a   :  { %2898 = vmatprep.mubr.msk.bf16.mxu0 %vm3486_vm0, %v3485_v1  ;;  %2926 = vmatprep.mubr.msk.bf16.mxu1 %vm3486_vm0, %v3485_v1 }
  0x31   :  { %2899 = vmatmul.mubr.msk.bf16.gmra.mxu0 %vm133_vm1, %v91_v47  ;;  %2927 = vmatmul.mubr.msk.bf16.gmra.mxu1 %vm133_vm1, %v98_v48 }
  0x32   :  { %2902 = vmatprep.mubr.msk.bf16.mxu0 %vm3486_vm0, %v3485_v1  ;;  %2930 = vmatprep.mubr.msk.bf16.mxu1 %vm3486_vm0, %v3485_v1 }
  0x39   :  { %2903 = vmatmul.mubr.msk.bf16.gmra.mxu0 %vm133_vm1, %v92_v55  ;;  %2931 = vmatmul.mubr.msk.bf16.gmra.mxu1 %vm133_vm1, %v99_v56 }
  0x3a   :  { %8 = vsyncpa [#allocation3], 0  ;;  %2906 = vmatprep.mubr.msk.bf16.mxu0 %vm3486_vm0, %v3485_v1  ;;  %2942 = vmatprep.mubr.msk.bf16.mxu1 %vm3486_vm0, %v3485_v1  ;;  %v75_v60 = vld [vmem:[%s4997_s0 + $0x69] sm:$0xff]  ;;  %v16_v61 = vld [vmem:[%s4997_s0] sm:$0xff]  ;;  %v807_v63 = vpack.c.bf16 %v3711_v58, %v3706_v57  ;;  %v534_v20 = vpack.c.bf16 %v3667_v44, %v3642_v38  ;;  %v535_v29 = vpack.c.bf16 %v3688_v52, %v3672_v45 }
  0x3b   :  { %v17_v62 = vld [vmem:[%s4997_s0 + $0x8] sm:$0xff]  ;;  %v93_v0 = vpack.c.bf16 %v75_v60, %v74_v59  ;;  %v3439_v3 = vld [vmem:[%s4998_s1 + $0x78] sm:$0xff]   ;;  %v18_v6 = vld [vmem:[%s4997_s0 + $0x10] sm:$0xff]  ;;  %v536_v36 = vpack.c.bf16 %v3706_v57, %v3695_v53 }
  0x3c   :  { %v41_v2 = vpack.c.bf16 %v17_v62, %v16_v61  ;;  %v3741_v4 = vld [vmem:[%s4997_s0 + $0x4a] sm:$0xff]  ;;  %v3746_v5 = vld [vmem:[%s4997_s0 + $0x52] sm:$0xff]  ;;  %v508_v8 = vld [vmem:[%s4997_s0 + $0x2] sm:$0xff] }
  0x3d   :  { %v19_v7 = vld [vmem:[%s4997_s0 + $0x18] sm:$0xff]  ;;  %v808_v9 = vpack.c.bf16 %v3746_v5, %v3741_v4  ;;  %v3441_v10 = vld [vmem:[%s4998_s1 + $0x70] sm:$0xff]   ;;  %v533_v12 = vpack.c.bf16 %v3637_v37, %v508_v8  ;;  %v3443_v14 = vld [vmem:[%s4998_s1 + $0x68] sm:$0xff]   ;;  %v537_v49 = vpack.c.bf16 %v3741_v4, %v3711_v58 }
  0x3e   :  { %v42_v11 = vpack.c.bf16 %v19_v7, %v18_v6  ;;  %v3440_v13 = vld [vmem:[%s4998_s1 + $0x98] sm:$0xff]   ;;  %v20_v15 = vld [vmem:[%s4997_s0 + $0x20] sm:$0xff]  ;;  %v21_v16 = vld [vmem:[%s4997_s0 + $0x28] sm:$0xff] }
  0x3f   :  { %v3442_v17 = vld [vmem:[%s4998_s1 + $0x90] sm:$0xff]   ;;  %v3445_v18 = vld [vmem:[%s4998_s1 + $0x60] sm:$0xff]   ;;  %v43_v19 = vpack.c.bf16 %v21_v16, %v20_v15  ;;  %v3444_v23 = vld [vmem:[%s4998_s1 + $0x88] sm:$0xff]  }
  0x40   :  { %v3800_v21 = vld [vmem:[%s4997_s0 + $0x5a] sm:$0xff]  ;;  %v3805_v22 = vld [vmem:[%s4997_s0 + $0x62] sm:$0xff]  ;;  %v22_v25 = vld [vmem:[%s4997_s0 + $0x30] sm:$0xff] }
  0x41   :  { %2907 = vmatmul.mubr.msk.bf16.gmra.mxu0 %vm133_vm1, %v93_v0  ;;  %2943 = vmatmul.mubr.msk.bf16.vlgmr.msra.gmra.mxu1 %vm133_vm1, %v41_v2  ;;  %v809_v24 = vpack.c.bf16 %v3805_v22, %v3800_v21  ;;  %v23_v26 = vld [vmem:[%s4997_s0 + $0x38] sm:$0xff]  ;;  %v3446_v27 = vld [vmem:[%s4998_s1 + $0x80] sm:$0xff]   ;;  %v3835_v30 = vld [vmem:[%s4997_s0 + $0x6a] sm:$0xff]  ;;  %v538_v61 = vpack.c.bf16 %v3800_v21, %v3746_v5 }
  0x42   :  { %2946 = vmatprep.mubr.msk.bf16.mxu1 %vm3486_vm0, %v3485_v1  ;;  %3002 = vmatprep.mubr.msk.bf16.mxu0 %vm3486_vm0, %v3485_v1  ;;  %v44_v28 = vpack.c.bf16 %v23_v26, %v22_v25  ;;  %v3840_v31 = vld [vmem:[%s4997_s0 + $0x72] sm:$0xff]  ;;  %v24_v33 = vld [vmem:[%s4997_s0 + $0x40] sm:$0xff]  ;;  %v25_v34 = vld [vmem:[%s4997_s0 + $0x48] sm:$0xff] }
  0x43   :  { %3055 = vmatpush3.bf16.msra.mxu1 %v3439_v3  ;;  %v810_v32 = vpack.c.bf16 %v3840_v31, %v3835_v30  ;;  %v45_v35 = vpack.c.bf16 %v25_v34, %v24_v33  ;;  %v3862_v40 = vld [vmem:[%s4997_s0 + $0x7a] sm:$0xff]  ;;  %v3867_v41 = vld [vmem:[%s4997_s0 + $0x82] sm:$0xff]  ;;  %v26_v43 = vld [vmem:[%s4997_s0 + $0x50] sm:$0xff]  ;;  %v539_v3 = vpack.c.bf16 %v3835_v30, %v3805_v22 }
  0x44   :  { %3056 = vmatprep.subr.bf16.mxu1 %v3485_v1  ;;  %v811_v42 = vpack.c.bf16 %v3867_v41, %v3862_v40  ;;  %v27_v47 = vld [vmem:[%s4997_s0 + $0x58] sm:$0xff]  ;;  %v3888_v50 = vld [vmem:[%s4997_s0 + $0x8a] sm:$0xff]  ;;  %v28_v56 = vld [vmem:[%s4997_s0 + $0x60] sm:$0xff] }
  0x45   :  { %v46_v48 = vpack.c.bf16 %v27_v47, %v26_v43  ;;  %v3893_v51 = vld [vmem:[%s4997_s0 + $0x92] sm:$0xff]  ;;  %v29_v59 = vld [vmem:[%s4997_s0 + $0x68] sm:$0xff]  ;;  %v32_v6 = vld [vmem:[%s4997_s0 + $0x80] sm:$0xff] }
  0x46   :  { %v812_v55 = vpack.c.bf16 %v3893_v51, %v3888_v50  ;;  %v47_v60 = vpack.c.bf16 %v29_v59, %v28_v56  ;;  %v30_v62 = vld [vmem:[%s4997_s0 + $0x70] sm:$0xff]  ;;  %v31_v0 = vld [vmem:[%s4997_s0 + $0x78] sm:$0xff]  ;;  %v33_v7 = vld [vmem:[%s4997_s0 + $0x88] sm:$0xff] }
  0x47   :  { %3057 = vmatpush3.bf16.msra.mxu1 %v3441_v10  ;;  %v48_v2 = vpack.c.bf16 %v31_v0, %v30_v62  ;;  %v49_v8 = vpack.c.bf16 %v33_v7, %v32_v6  ;;  %v540_v10 = vpack.c.bf16 %v3862_v40, %v3840_v31  ;;  %v36_v15 = vld [vmem:[%s4997_s0 + $0xa0] sm:$0xff]  ;;  %v37_v16 = vld [vmem:[%s4997_s0 + $0xa8] sm:$0xff]  ;;  %v4008_v33 = vld [vmem:[%s4997_s0 + $0xb2] sm:$0xff] }
  0x48   :  { %3058 = vmatprep.subr.bf16.mxu1 %v3485_v1  ;;  %v3987_v25 = vld [vmem:[%s4997_s0 + $0xa2] sm:$0xff]  ;;  %v3992_v26 = vld [vmem:[%s4997_s0 + $0xaa] sm:$0xff]  ;;  %v4013_v34 = vld [vmem:[%s4997_s0 + $0xba] sm:$0xff] }
  0x49   :  { %2947 = vmatmul.mubr.msk.bf16.gmra.mxu1 %vm133_vm1, %v42_v11  ;;  %3003 = vmatmul.mubr.msk.bf16.vlgmr.msra.gmra.mxu0 %vm133_vm1, %v533_v12  ;;  %v34_v11 = vld [vmem:[%s4997_s0 + $0x90] sm:$0xff]  ;;  %v35_v12 = vld [vmem:[%s4997_s0 + $0x98] sm:$0xff]  ;;  %v4026_v43 = vld [vmem:[%s4997_s0 + $0xc2] sm:$0xff] }
  0x4a   :  { %3115 = vmatpush3.bf16.msra.mxu0 %v3440_v13  ;;  %2950 = vmatprep.mubr.msk.bf16.mxu1 %vm3486_vm0, %v3485_v1  ;;  %v50_v13 = vpack.c.bf16 %v35_v12, %v34_v11  ;;  %v545_v47 = vpack.c.bf16 %v4026_v43, %v4026_v43  ;;  %v1051_v56 = vld [vmem:[%s4997_s0 + $0x13] sm:$0xff]  ;;  %v3451_v59 = vld [vmem:[%s4998_s1 + $0xa8] sm:$0xff]   ;;  %v3453_v45 = vld [vmem:[%s4998_s1 + $0xa0] sm:$0xff]  }
  0x4b   :  { %3006 = vmatprep.mubr.msk.bf16.mxu0 %vm3486_vm0, %v3485_v1  ;;  %3116 = vmatprep.subr.bf16.mxu0 %v3485_v1  ;;  %v3449_v37 = vld [vmem:[%s4998_s1 + $0xb0] sm:$0xff]   ;;  %v3452_v62 = vld [vmem:[%s4998_s1 + $0xc8] sm:$0xff]   ;;  %v3454_v52 = vld [vmem:[%s4998_s1 + $0xc0] sm:$0xff]  }
  0x4c   :  { %3059 = vmatpush3.bf16.msra.mxu1 %v3443_v14  ;;  %v541_v14 = vpack.c.bf16 %v3888_v50, %v3867_v41  ;;  %v3450_v44 = vld [vmem:[%s4998_s1 + $0xd0] sm:$0xff]   ;;  %v1061_v7 = vld [vmem:[%s4997_s0 + $0x63] sm:$0xff] }
  0x4d   :  { %3060 = vmatprep.subr.bf16.mxu1 %v3485_v1  ;;  %v1054_v0 = vld [vmem:[%s4997_s0 + $0x2b] sm:$0xff]  ;;  %v1059_v58 = vld [vmem:[%s4997_s0 + $0x53] sm:$0xff] }
  0x4e   :  { %3117 = vmatpush3.bf16.msra.mxu0 %v3442_v17  ;;  %v3968_v17 = vld [vmem:[%s4997_s0 + $0x9a] sm:$0xff]  ;;  %v1058_v57 = vld [vmem:[%s4997_s0 + $0x4b] sm:$0xff] }
  0x4f   :  { %3118 = vmatprep.subr.bf16.mxu0 %v3485_v1 }
  0x50   :  { %3061 = vmatpush3.bf16.msra.mxu1 %v3445_v18  ;;  %v51_v18 = vpack.c.bf16 %v37_v16, %v36_v15  ;;  %v1062_v15 = vld [vmem:[%s4997_s0 + $0x6b] sm:$0xff]  ;;  %v1063_v16 = vld [vmem:[%s4997_s0 + $0x73] sm:$0xff] }
  0x51   :  { %2951 = vmatmul.mubr.msk.bf16.gmra.mxu1 %vm133_vm1, %v43_v19  ;;  %3007 = vmatmul.mubr.msk.bf16.gmra.mxu0 %vm133_vm1, %v534_v20  ;;  %v542_v19 = vpack.c.bf16 %v3968_v17, %v3893_v51  ;;  %v38_v20 = vld [vmem:[%s4997_s0 + $0xb0] sm:$0xff] }
  0x52   :  { %2954 = vmatprep.mubr.msk.bf16.mxu1 %vm3486_vm0, %v3485_v1  ;;  %3010 = vmatprep.mubr.msk.bf16.mxu0 %vm3486_vm0, %v3485_v1 }
  0x53   :  { %3119 = vmatpush3.bf16.msra.mxu0 %v3444_v23  ;;  %3174 = vmatprep.subr.bf16.mxu1 %v3485_v1  ;;  %v39_v23 = vld [vmem:[%s4997_s0 + $0xb8] sm:$0xff] }
  0x54   :  { %3120 = vmatprep.subr.bf16.mxu0 %v3485_v1 }
  0x57   :  { %3121 = vmatpush3.bf16.msra.mxu0 %v3446_v27  ;;  %v52_v27 = vpack.c.bf16 %v39_v23, %v38_v20 }
  0x58   :  { %3234 = vmatprep.subr.bf16.mxu0 %v3485_v1 }
  0x59   :  { %2955 = vmatmul.mubr.msk.bf16.gmra.mxu1 %vm133_vm1, %v44_v28  ;;  %3011 = vmatmul.mubr.msk.bf16.gmra.mxu0 %vm133_vm1, %v535_v29  ;;  %v543_v28 = vpack.c.bf16 %v3992_v26, %v3987_v25  ;;  %v40_v29 = vld [vmem:[%s4997_s0 + $0xc0] sm:$0xff] }
  0x5a   :  { %2958 = vmatprep.mubr.msk.bf16.mxu1 %vm3486_vm0, %v3485_v1  ;;  %3014 = vmatprep.mubr.msk.bf16.mxu0 %vm3486_vm0, %v3485_v1 }
  0x61   :  { %2959 = vmatmul.mubr.msk.bf16.gmra.mxu1 %vm133_vm1, %v45_v35  ;;  %3015 = vmatmul.mubr.msk.bf16.gmra.mxu0 %vm133_vm1, %v536_v36  ;;  %v53_v35 = vpack.c.bf16 %v40_v29, %v40_v29  ;;  %v544_v36 = vpack.c.bf16 %v4013_v34, %v4008_v33  ;;  %v1064_v29 = vld [vmem:[%s4997_s0 + $0x7b] sm:$0xff] }
  0x62   :  { %2962 = vmatprep.mubr.msk.bf16.mxu1 %vm3486_vm0, %v3485_v1  ;;  %3018 = vmatprep.mubr.msk.bf16.mxu0 %vm3486_vm0, %v3485_v1 }
  0x69   :  { %2963 = vmatmul.mubr.msk.bf16.gmra.mxu1 %vm133_vm1, %v46_v48  ;;  %3019 = vmatmul.mubr.msk.bf16.gmra.mxu0 %vm133_vm1, %v537_v49  ;;  %v3447_v48 = vld [vmem:[%s4998_s1 + $0xb8] sm:$0xff]   ;;  %v1050_v49 = vld [vmem:[%s4997_s0 + $0xb] sm:$0xff] }
  0x6a   :  { %2966 = vmatprep.mubr.msk.bf16.mxu1 %vm3486_vm0, %v3485_v1  ;;  %3022 = vmatprep.mubr.msk.bf16.mxu0 %vm3486_vm0, %v3485_v1  ;;  %v1075_v38 = vpack.c.bf16 %v1051_v56, %v1050_v49 }
  0x71   :  { %2967 = vmatmul.mubr.msk.bf16.gmra.mxu1 %vm133_vm1, %v47_v60  ;;  %3023 = vmatmul.mubr.msk.bf16.gmra.mxu0 %vm133_vm1, %v538_v61  ;;  %v1052_v60 = vld [vmem:[%s4997_s0 + $0x1b] sm:$0xff]  ;;  %v1053_v61 = vld [vmem:[%s4997_s0 + $0x23] sm:$0xff] }
  0x72   :  { %2970 = vmatprep.mubr.msk.bf16.mxu1 %vm3486_vm0, %v3485_v1  ;;  %3026 = vmatprep.mubr.msk.bf16.mxu0 %vm3486_vm0, %v3485_v1 }
  0x79   :  { %2971 = vmatmul.mubr.msk.bf16.gmra.mxu1 %vm133_vm1, %v48_v2  ;;  %3027 = vmatmul.mubr.msk.bf16.gmra.mxu0 %vm133_vm1, %v539_v3  ;;  %v1055_v2 = vld [vmem:[%s4997_s0 + $0x33] sm:$0xff]  ;;  %v1057_v3 = vld [vmem:[%s4997_s0 + $0x43] sm:$0xff] }
  0x7a   :  { %2974 = vmatprep.mubr.msk.bf16.mxu1 %vm3486_vm0, %v3485_v1  ;;  %3030 = vmatprep.mubr.msk.bf16.mxu0 %vm3486_vm0, %v3485_v1  ;;  %v1077_v53 = vpack.c.bf16 %v1055_v2, %v1054_v0 }
  0x81   :  { %2975 = vmatmul.mubr.msk.bf16.gmra.mxu1 %vm133_vm1, %v49_v8  ;;  %3031 = vmatmul.mubr.msk.bf16.gmra.mxu0 %vm133_vm1, %v540_v10 }
  0x82   :  { %2978 = vmatprep.mubr.msk.bf16.mxu1 %vm3486_vm0, %v3485_v1  ;;  %3034 = vmatprep.mubr.msk.bf16.mxu0 %vm3486_vm0, %v3485_v1 }
  0x89   :  { %2979 = vmatmul.mubr.msk.bf16.gmra.mxu1 %vm133_vm1, %v50_v13  ;;  %3035 = vmatmul.mubr.msk.bf16.gmra.mxu0 %vm133_vm1, %v541_v14 }
  0x8a   :  { %2982 = vmatprep.mubr.msk.bf16.mxu1 %vm3486_vm0, %v3485_v1  ;;  %3038 = vmatprep.mubr.msk.bf16.mxu0 %vm3486_vm0, %v3485_v1 }
  0x91   :  { %2983 = vmatmul.mubr.msk.bf16.gmra.mxu1 %vm133_vm1, %v51_v18  ;;  %3039 = vmatmul.mubr.msk.bf16.gmra.mxu0 %vm133_vm1, %v542_v19  ;;  %v1081_v19 = vpack.c.bf16 %v1063_v16, %v1062_v15 }
  0x92   :  { %2986 = vmatprep.mubr.msk.bf16.mxu1 %vm3486_vm0, %v3485_v1  ;;  %3042 = vmatprep.mubr.msk.bf16.mxu0 %vm3486_vm0, %v3485_v1 }
  0x99   :  { %2987 = vmatmul.mubr.msk.bf16.gmra.mxu1 %vm133_vm1, %v52_v27  ;;  %3043 = vmatmul.mubr.msk.bf16.gmra.mxu0 %vm133_vm1, %v543_v28 }
  0x9a   :  { %2990 = vmatprep.mubr.msk.bf16.mxu1 %vm3486_vm0, %v3485_v1  ;;  %3046 = vmatprep.mubr.msk.bf16.mxu0 %vm3486_vm0, %v3485_v1 }
  0xa1   :  { %2991 = vmatmul.mubr.msk.bf16.gmra.mxu1 %vm133_vm1, %v53_v35  ;;  %3047 = vmatmul.mubr.msk.bf16.gmra.mxu0 %vm133_vm1, %v544_v36  ;;  %v1065_v35 = vld [vmem:[%s4997_s0 + $0x83] sm:$0xff] }
  0xa2   :  { %3050 = vmatprep.mubr.msk.bf16.mxu0 %vm3486_vm0, %v3485_v1  ;;  %3062 = vmatprep.mubr.msk.bf16.mxu1 %vm3486_vm0, %v3485_v1 }
  0xa9   :  { %3051 = vmatmul.mubr.msk.bf16.gmra.mxu0 %vm133_vm1, %v545_v47  ;;  %3063 = vmatmul.mubr.msk.bf16.vlgmr.msra.gmra.mxu1 %vm133_vm1, %v804_v39  ;;  %v3448_v39 = vld [vmem:[%s4998_s1 + $0xd8] sm:$0xff]   ;;  %v1082_v47 = vpack.c.bf16 %v1065_v35, %v1064_v29 }
  0xaa   :  { %3066 = vmatprep.mubr.msk.bf16.mxu1 %vm3486_vm0, %v3485_v1  ;;  %3122 = vmatprep.mubr.msk.bf16.mxu0 %vm3486_vm0, %v3485_v1 }
  0xab   :  { %3175 = vmatpush3.bf16.msra.mxu1 %v3447_v48 }
  0xac   :  { %3176 = vmatprep.subr.bf16.mxu1 %v3485_v1 }
  0xaf   :  { %3177 = vmatpush3.bf16.msra.mxu1 %v3449_v37 }
  0xb0   :  { %3178 = vmatprep.subr.bf16.mxu1 %v3485_v1 }
  0xb1   :  { %3067 = vmatmul.mubr.msk.bf16.gmra.mxu1 %vm133_vm1, %v805_v46  ;;  %3123 = vmatmul.mubr.msk.bf16.vlgmr.msra.gmra.mxu0 %vm133_vm1, %v1075_v38  ;;  %v1076_v46 = vpack.c.bf16 %v1053_v61, %v1052_v60  ;;  %v1066_v38 = vld [vmem:[%s4997_s0 + $0x8b] sm:$0xff]  ;;  %v813_v60 = vpack.c.bf16 %v3987_v25, %v3968_v17  ;;  %v1068_v17 = vld [vmem:[%s4997_s0 + $0x9b] sm:$0xff]  ;;  %v1069_v25 = vld [vmem:[%s4997_s0 + $0xa3] sm:$0xff] }
  0xb2   :  { %3235 = vmatpush3.bf16.msra.mxu0 %v3448_v39  ;;  %3070 = vmatprep.mubr.msk.bf16.mxu1 %vm3486_vm0, %v3485_v1  ;;  %v1067_v39 = vld [vmem:[%s4997_s0 + $0x93] sm:$0xff] }
  0xb3   :  { %3126 = vmatprep.mubr.msk.bf16.mxu0 %vm3486_vm0, %v3485_v1  ;;  %3236 = vmatprep.subr.bf16.mxu0 %v3485_v1  ;;  %v1083_v61 = vpack.c.bf16 %v1067_v39, %v1066_v38 }
  0xb4   :  { %3179 = vmatpush3.bf16.msra.mxu1 %v3451_v59 }
  0xb5   :  { %3180 = vmatprep.subr.bf16.mxu1 %v3485_v1 }
  0xb6   :  { %3237 = vmatpush3.bf16.msra.mxu0 %v3450_v44 }
  0xb7   :  { %3238 = vmatprep.subr.bf16.mxu0 %v3485_v1 }
  0xb8   :  { %3181 = vmatpush3.bf16.msra.mxu1 %v3453_v45 }
  0xb9   :  { %3071 = vmatmul.mubr.msk.bf16.gmra.mxu1 %vm133_vm1, %v806_v54  ;;  %3127 = vmatmul.mubr.msk.bf16.gmra.mxu0 %vm133_vm1, %v1076_v46  ;;  %v1056_v54 = vld [vmem:[%s4997_s0 + $0x3b] sm:$0xff] }
  0xba   :  { %3074 = vmatprep.mubr.msk.bf16.mxu1 %vm3486_vm0, %v3485_v1  ;;  %3130 = vmatprep.mubr.msk.bf16.mxu0 %vm3486_vm0, %v3485_v1  ;;  %v1078_v6 = vpack.c.bf16 %v1057_v3, %v1056_v54  ;;  %v814_v54 = vpack.c.bf16 %v4008_v33, %v3992_v26  ;;  %v1084_v3 = vpack.c.bf16 %v1069_v25, %v1068_v17  ;;  %v1070_v26 = vld [vmem:[%s4997_s0 + $0xab] sm:$0xff]  ;;  %v1071_v33 = vld [vmem:[%s4997_s0 + $0xb3] sm:$0xff] }
  0xbb   :  { %3239 = vmatpush3.bf16.msra.mxu0 %v3452_v62  ;;  %3294 = vmatprep.subr.bf16.mxu1 %v3485_v1 }
  0xbc   :  { %3240 = vmatprep.subr.bf16.mxu0 %v3485_v1 }
  0xbf   :  { %3241 = vmatpush3.bf16.msra.mxu0 %v3454_v52 }
  0xc0   :  { %3354 = vmatprep.subr.bf16.mxu0 %v3485_v1 }
  0xc1   :  { %3075 = vmatmul.mubr.msk.bf16.gmra.mxu1 %vm133_vm1, %v807_v63  ;;  %3131 = vmatmul.mubr.msk.bf16.gmra.mxu0 %vm133_vm1, %v1077_v53  ;;  %v1079_v63 = vpack.c.bf16 %v1059_v58, %v1058_v57 }
  0xc2   :  { %3078 = vmatprep.mubr.msk.bf16.mxu1 %vm3486_vm0, %v3485_v1  ;;  %3134 = vmatprep.mubr.msk.bf16.mxu0 %vm3486_vm0, %v3485_v1 }
  0xc9   :  { %3079 = vmatmul.mubr.msk.bf16.gmra.mxu1 %vm133_vm1, %v808_v9  ;;  %3135 = vmatmul.mubr.msk.bf16.gmra.mxu0 %vm133_vm1, %v1078_v6  ;;  %v1060_v9 = vld [vmem:[%s4997_s0 + $0x5b] sm:$0xff] }
  0xca   :  { %3082 = vmatprep.mubr.msk.bf16.mxu1 %vm3486_vm0, %v3485_v1  ;;  %3138 = vmatprep.mubr.msk.bf16.mxu0 %vm3486_vm0, %v3485_v1  ;;  %v1080_v10 = vpack.c.bf16 %v1061_v7, %v1060_v9 }
  0xd1   :  { %v4137_v4 = vpop.f32.mrf.mxu0  ;;  %v4139_v5 = vpop.f32.mrf.mxu1  ;;  %3083 = vmatmul.mubr.msk.bf16.gmra.mxu1 %vm133_vm1, %v809_v24  ;;  %3139 = vmatmul.mubr.msk.bf16.gmra.mxu0 %vm133_vm1, %v1079_v63 }
  0xd2   :  { %3086 = vmatprep.mubr.msk.bf16.mxu1 %vm3486_vm0, %v3485_v1  ;;  %3142 = vmatprep.mubr.msk.bf16.mxu0 %vm3486_vm0, %v3485_v1 }
  0xd3   :  { %v2884_v8 = vpop.f32.mrf.mxu0  ;;  %v2912_v21 = vpop.f32.mrf.mxu1 }
  0xd5   :  { %v4156_v22 = vpop.f32.mrf.mxu0  ;;  %v4158_v24 = vpop.f32.mrf.mxu1 }
  0xd7   :  { %v2885_v11 = vpop.f32.mrf.mxu0  ;;  %v2913_v12 = vpop.f32.mrf.mxu1 }
  0xd8   :  { %v1085_v11 = vpack.c.bf16 %v1071_v33, %v1070_v26 }
  0xd9   :  { %v4160_v13 = vpop.f32.mrf.mxu0  ;;  %v4162_v14 = vpop.f32.mrf.mxu1  ;;  %3087 = vmatmul.mubr.msk.bf16.gmra.mxu1 %vm133_vm1, %v810_v32  ;;  %3143 = vmatmul.mubr.msk.bf16.gmra.mxu0 %vm133_vm1, %v1080_v10  ;;  %v815_v10 = vpack.c.bf16 %v4026_v43, %v4013_v34  ;;  %v803_v34 = vld [vmem:[%s4997_s0 + $0xca] sm:$0xff]  ;;  %v1072_v43 = vld [vmem:[%s4997_s0 + $0xbb] sm:$0xff] }
  0xda   :  { %3090 = vmatprep.mubr.msk.bf16.mxu1 %vm3486_vm0, %v3485_v1  ;;  %3146 = vmatprep.mubr.msk.bf16.mxu0 %vm3486_vm0, %v3485_v1  ;;  %v816_v35 = vpack.c.bf16 %v803_v34, %v803_v34 }
  0xdb   :  { %v2888_v18 = vpop.f32.mrf.mxu0  ;;  %v2916_v30 = vpop.f32.mrf.mxu1 }
  0xdd   :  { %v4179_v31 = vpop.f32.mrf.mxu0  ;;  %v4181_v32 = vpop.f32.mrf.mxu1 }
  0xdf   :  { %v2889_v20 = vpop.f32.mrf.mxu0  ;;  %v2917_v23 = vpop.f32.mrf.mxu1 }
  0xe1   :  { %v4183_v27 = vpop.f32.mrf.mxu0  ;;  %v4185_v28 = vpop.f32.mrf.mxu1  ;;  %3091 = vmatmul.mubr.msk.bf16.gmra.mxu1 %vm133_vm1, %v811_v42  ;;  %3147 = vmatmul.mubr.msk.bf16.gmra.mxu0 %vm133_vm1, %v1081_v19  ;;  %v1073_v19 = vld [vmem:[%s4997_s0 + $0xc3] sm:$0xff] }
  0xe2   :  { %3094 = vmatprep.mubr.msk.bf16.mxu1 %vm3486_vm0, %v3485_v1  ;;  %3150 = vmatprep.mubr.msk.bf16.mxu0 %vm3486_vm0, %v3485_v1 }
  0xe3   :  { %v2892_v36 = vpop.f32.mrf.mxu0  ;;  %v2920_v40 = vpop.f32.mrf.mxu1 }
  0xe4   :  { %v1086_v36 = vpack.c.bf16 %v1073_v19, %v1072_v43  ;;  %v3456_v43 = vld [vmem:[%s4998_s1 + $0x118] sm:$0xff]  }
  0xe5   :  { %v4202_v41 = vpop.f32.mrf.mxu0  ;;  %v4204_v42 = vpop.f32.mrf.mxu1 }
  0xe7   :  { %v2893_v48 = vpop.f32.mrf.mxu0  ;;  %v2921_v49 = vpop.f32.mrf.mxu1 }
  0xe9   :  { %v4206_v56 = vpop.f32.mrf.mxu0  ;;  %v4208_v37 = vpop.f32.mrf.mxu1  ;;  %3095 = vmatmul.mubr.msk.bf16.gmra.mxu1 %vm133_vm1, %v812_v55  ;;  %3151 = vmatmul.mubr.msk.bf16.gmra.mxu0 %vm133_vm1, %v1082_v47 }
  0xea   :  { %3098 = vmatprep.mubr.msk.bf16.mxu1 %vm3486_vm0, %v3485_v1  ;;  %3154 = vmatprep.mubr.msk.bf16.mxu0 %vm3486_vm0, %v3485_v1 }
  0xeb   :  { %v2896_v59 = vpop.f32.mrf.mxu0  ;;  %v2924_v50 = vpop.f32.mrf.mxu1 }
  0xec   :  { %v1321_v50 = vld [vmem:[%s4997_s0 + $0xc] sm:$0xff] }
  0xed   :  { %v4225_v51 = vpop.f32.mrf.mxu0  ;;  %v4227_v55 = vpop.f32.mrf.mxu1 }
  0xef   :  { %v2897_v44 = vpop.f32.mrf.mxu0  ;;  %v2925_v45 = vpop.f32.mrf.mxu1 }
  0xf1   :  { %v4231_v46 = vpop.f32.mrf.mxu0  ;;  %v4233_v62 = vpop.f32.mrf.mxu1  ;;  %3099 = vmatmul.mubr.msk.bf16.gmra.mxu1 %vm133_vm1, %v813_v60  ;;  %3155 = vmatmul.mubr.msk.bf16.gmra.mxu0 %vm133_vm1, %v1083_v61 }
  0xf2   :  { %3102 = vmatprep.mubr.msk.bf16.mxu1 %vm3486_vm0, %v3485_v1  ;;  %3158 = vmatprep.mubr.msk.bf16.mxu0 %vm3486_vm0, %v3485_v1 }
  0xf3   :  { %v2900_v0 = vpop.f32.mrf.mxu0  ;;  %v2928_v2 = vpop.f32.mrf.mxu1 }
  0xf5   :  { %v4247_v52 = vpop.f32.mrf.mxu0  ;;  %v4249_v53 = vpop.f32.mrf.mxu1 }
  0xf7   :  { %v2901_v6 = vpop.f32.mrf.mxu0  ;;  %v2929_v57 = vpop.f32.mrf.mxu1 }
  0xf8   :  { %v3455_v6 = vld [vmem:[%s4998_s1 + $0xf8] sm:$0xff]  }
  0xf9   :  { %v4253_v58 = vpop.f32.mrf.mxu0  ;;  %v4255_v63 = vpop.f32.mrf.mxu1  ;;  %3103 = vmatmul.mubr.msk.bf16.gmra.mxu1 %vm133_vm1, %v814_v54  ;;  %3159 = vmatmul.mubr.msk.bf16.gmra.mxu0 %vm133_vm1, %v1084_v3 }
  0xfa   :  { %3106 = vmatprep.mubr.msk.bf16.mxu1 %vm3486_vm0, %v3485_v1  ;;  %3162 = vmatprep.mubr.msk.bf16.mxu0 %vm3486_vm0, %v3485_v1 }
  0xfb   :  { %v2904_v9 = vpop.f32.mrf.mxu0  ;;  %v2932_v7 = vpop.f32.mrf.mxu1 }
  0xfc   :  { %v1324_v7 = vld [vmem:[%s4997_s0 + $0x24] sm:$0xff] }
  0xfd   :  { %v4269_v8 = vpop.f32.mrf.mxu0  ;;  %v306_v21 = vpop.f32.mrf.mxu1 }
  0xff   :  { %v2905_v12 = vpop.f32.mrf.mxu0  ;;  %v2933_v15 = vpop.f32.mrf.mxu1 }
 0x101   :  { %v4273_v16 = vpop.f32.mrf.mxu0  ;;  %v406_v18 = vpop.f32.mrf.mxu1  ;;  %3107 = vmatmul.mubr.msk.bf16.gmra.mxu1 %vm133_vm1, %v815_v10  ;;  %3163 = vmatmul.mubr.msk.bf16.gmra.mxu0 %vm133_vm1, %v1085_v11 }
 0x102   :  { %v407_v30 = vadd.f32 %v406_v18, %v4137_v4  ;;  %3110 = vmatprep.mubr.msk.bf16.mxu1 %vm3486_vm0, %v3485_v1  ;;  %3166 = vmatprep.mubr.msk.bf16.mxu0 %vm3486_vm0, %v3485_v1 }
 0x103   :  { %v2908_v20 = vpop.f32.mrf.mxu0  ;;  %v2944_v4 = vpop.f32.mrf.mxu1 }
 0x104   :  { %v3459_v4 = vld [vmem:[%s4998_s1 + $0xe8] sm:$0xff]  }
 0x105   :  { %v4291_v23 = vpop.f32.mrf.mxu0  ;;  %v409_v29 = vpop.f32.mrf.mxu1 }
 0x106   :  { %v410_v40 = vadd.f32 %v409_v29, %v4156_v22  ;;  %v1074_v22 = vld [vmem:[%s4997_s0 + $0xcb] sm:$0xff] }
 0x107   :  { %v2909_v47 = vpop.f32.mrf.mxu0  ;;  %v2945_v48 = vpop.f32.mrf.mxu1  ;;  %v1087_v17 = vpack.c.bf16 %v1074_v22, %v1074_v22 }
 0x108   :  { %v1326_v47 = vld [vmem:[%s4997_s0 + $0x34] sm:$0xff] }
 0x109   :  { %v414_v49 = vpop.f32.mrf.mxu1  ;;  %v652_v38 = vpop.f32.mrf.mxu0  ;;  %3111 = vmatmul.mubr.msk.bf16.gmra.mxu1 %vm133_vm1, %v816_v35  ;;  %3167 = vmatmul.mubr.msk.bf16.gmra.mxu0 %vm133_vm1, %v1086_v36  ;;  %v3458_v48 = vld [vmem:[%s4998_s1 + $0x110] sm:$0xff]  }
 0x10a   :  { %v415_v39 = vadd.f32 %v414_v49, %v4160_v13  ;;  %v4297_v59 = vadd.f32 %v652_v38, %v407_v30  ;;  %3170 = vmatprep.mubr.msk.bf16.mxu0 %vm3486_vm0, %v3485_v1  ;;  %3182 = vmatprep.mubr.msk.bf16.mxu1 %vm3486_vm0, %v3485_v1  ;;  %v1322_v13 = vld [vmem:[%s4997_s0 + $0x14] sm:$0xff]  ;;  %v3461_v38 = vld [vmem:[%s4998_s1 + $0xe0] sm:$0xff]  }
 0x10b   :  { %v2948_v60 = vpop.f32.mrf.mxu1  ;;  %v3004_v61 = vpop.f32.mrf.mxu0  ;;  %v1346_v25 = vpack.c.bf16 %v1322_v13, %v1321_v50 }
 0x10d   :  { %v417_v44 = vpop.f32.mrf.mxu1  ;;  %v655_v45 = vpop.f32.mrf.mxu0 }
 0x10e   :  { %v418_v0 = vadd.f32 %v417_v44, %v4179_v31  ;;  %v4313_v2 = vadd.f32 %v655_v45, %v410_v40  ;;  %v1323_v31 = vld [vmem:[%s4997_s0 + $0x1c] sm:$0xff]  ;;  %v1325_v40 = vld [vmem:[%s4997_s0 + $0x2c] sm:$0xff] }
 0x10f   :  { %v2949_v54 = vpop.f32.mrf.mxu1  ;;  %v3005_v3 = vpop.f32.mrf.mxu0  ;;  %v1347_v15 = vpack.c.bf16 %v1324_v7, %v1323_v31  ;;  %v1617_v18 = vpack.c.bf16 %v1323_v31, %v1322_v13  ;;  %v1348_v50 = vpack.c.bf16 %v1326_v47, %v1325_v40  ;;  %v1618_v13 = vpack.c.bf16 %v1325_v40, %v1324_v7 }
 0x110   :  { %v1327_v3 = vld [vmem:[%s4997_s0 + $0x3c] sm:$0xff] }
 0x111   :  { %v422_v57 = vpop.f32.mrf.mxu1  ;;  %v660_v26 = vpop.f32.mrf.mxu0  ;;  %3171 = vmatmul.mubr.msk.bf16.gmra.mxu0 %vm133_vm1, %v1087_v17  ;;  %3183 = vmatmul.mubr.msk.bf16.vlgmr.msra.gmra.mxu1 %vm133_vm1, %v1346_v25  ;;  %v3460_v17 = vld [vmem:[%s4998_s1 + $0x108] sm:$0xff]  }
 0x112   :  { %v423_v33 = vadd.f32 %v422_v57, %v4183_v27  ;;  %v4321_v9 = vadd.f32 %v660_v26, %v415_v39  ;;  %3186 = vmatprep.mubr.msk.bf16.mxu1 %vm3486_vm0, %v3485_v1  ;;  %3242 = vmatprep.mubr.msk.bf16.mxu0 %vm3486_vm0, %v3485_v1  ;;  %v3457_v27 = vld [vmem:[%s4998_s1 + $0xf0] sm:$0xff]  }
 0x113   :  { %v2952_v21 = vpop.f32.mrf.mxu1  ;;  %v3008_v10 = vpop.f32.mrf.mxu0  ;;  %3295 = vmatpush3.bf16.msra.mxu1 %v3455_v6  ;;  %v1328_v6 = vld [vmem:[%s4997_s0 + $0x44] sm:$0xff] }
 0x114   :  { %3296 = vmatprep.subr.bf16.mxu1 %v3485_v1  ;;  %v1349_v7 = vpack.c.bf16 %v1328_v6, %v1327_v3  ;;  %v1619_v21 = vpack.c.bf16 %v1327_v3, %v1326_v47 }
 0x115   :  { %v425_v11 = vpop.f32.mrf.mxu1  ;;  %v663_v12 = vpop.f32.mrf.mxu0 }
 0x116   :  { %v426_v30 = vadd.f32 %v425_v11, %v4202_v41  ;;  %v4338_v34 = vadd.f32 %v663_v12, %v418_v0 }
 0x117   :  { %v2953_v19 = vpop.f32.mrf.mxu1  ;;  %v3009_v20 = vpop.f32.mrf.mxu0  ;;  %3297 = vmatpush3.bf16.msra.mxu1 %v3457_v27 }
 0x118   :  { %3298 = vmatprep.subr.bf16.mxu1 %v3485_v1  ;;  %v1330_v19 = vld [vmem:[%s4997_s0 + $0x54] sm:$0xff] }
 0x119   :  { %v430_v29 = vpop.f32.mrf.mxu1  ;;  %v668_v35 = vpop.f32.mrf.mxu0  ;;  %3187 = vmatmul.mubr.msk.bf16.gmra.mxu1 %vm133_vm1, %v1347_v15  ;;  %3243 = vmatmul.mubr.msk.bf16.vlgmr.msra.gmra.mxu0 %vm133_vm1, %v1617_v18 }
 0x11a   :  { %v431_v41 = vadd.f32 %v430_v29, %v4206_v56  ;;  %v4350_v36 = vadd.f32 %v668_v35, %v423_v33  ;;  %3355 = vmatpush3.bf16.msra.mxu0 %v3456_v43  ;;  %3190 = vmatprep.mubr.msk.bf16.mxu1 %vm3486_vm0, %v3485_v1 }
 0x11b   :  { %v2956_v49 = vpop.f32.mrf.mxu1  ;;  %v3012_v56 = vpop.f32.mrf.mxu0  ;;  %3246 = vmatprep.mubr.msk.bf16.mxu0 %vm3486_vm0, %v3485_v1  ;;  %3356 = vmatprep.subr.bf16.mxu0 %v3485_v1 }
 0x11c   :  { %3299 = vmatpush3.bf16.msra.mxu1 %v3459_v4 }
 0x11d   :  { %v433_v39 = vpop.f32.mrf.mxu1  ;;  %v671_v22 = vpop.f32.mrf.mxu0  ;;  %3300 = vmatprep.subr.bf16.mxu1 %v3485_v1 }
 0x11e   :  { %v434_v60 = vadd.f32 %v433_v39, %v4225_v51  ;;  %v4371_v61 = vadd.f32 %v671_v22, %v426_v30  ;;  %3357 = vmatpush3.bf16.msra.mxu0 %v3458_v48 }
 0x11f   :  { %v2957_v44 = vpop.f32.mrf.mxu1  ;;  %v3013_v45 = vpop.f32.mrf.mxu0  ;;  %3358 = vmatprep.subr.bf16.mxu0 %v3485_v1 }
 0x120   :  { %3301 = vmatpush3.bf16.msra.mxu1 %v3461_v38 }
 0x121   :  { %v438_v25 = vpop.f32.mrf.mxu1  ;;  %v676_v0 = vpop.f32.mrf.mxu0  ;;  %3191 = vmatmul.mubr.msk.bf16.gmra.mxu1 %vm133_vm1, %v1348_v50  ;;  %3247 = vmatmul.mubr.msk.bf16.gmra.mxu0 %vm133_vm1, %v1618_v13  ;;  %v1332_v50 = vld [vmem:[%s4997_s0 + $0x64] sm:$0xff] }
 0x122   :  { %v439_v51 = vadd.f32 %v438_v25, %v4231_v46  ;;  %v4380_v54 = vadd.f32 %v676_v0, %v431_v41  ;;  %3194 = vmatprep.mubr.msk.bf16.mxu1 %vm3486_vm0, %v3485_v1  ;;  %3250 = vmatprep.mubr.msk.bf16.mxu0 %vm3486_vm0, %v3485_v1  ;;  %v3462_v46 = vld [vmem:[%s4998_s1 + $0x100] sm:$0xff]  }
 0x123   :  { %v2960_v57 = vpop.f32.mrf.mxu1  ;;  %v3016_v26 = vpop.f32.mrf.mxu0  ;;  %3359 = vmatpush3.bf16.msra.mxu0 %v3460_v17 }
 0x124   :  { %3360 = vmatprep.subr.bf16.mxu0 %v3485_v1 }
 0x125   :  { %v441_v33 = vpop.f32.mrf.mxu1  ;;  %v679_v31 = vpop.f32.mrf.mxu0 }
 0x126   :  { %v442_v10 = vadd.f32 %v441_v33, %v4247_v52  ;;  %v4397_v27 = vadd.f32 %v679_v31, %v434_v60  ;;  %v1329_v52 = vld [vmem:[%s4997_s0 + $0x4c] sm:$0xff] }
 0x127   :  { %v2961_v11 = vpop.f32.mrf.mxu1  ;;  %v3017_v12 = vpop.f32.mrf.mxu0  ;;  %3361 = vmatpush3.bf16.msra.mxu0 %v3462_v46  ;;  %v1350_v35 = vpack.c.bf16 %v1330_v19, %v1329_v52  ;;  %v1620_v41 = vpack.c.bf16 %v1329_v52, %v1328_v6  ;;  %v1334_v46 = vld [vmem:[%s4997_s0 + $0x74] sm:$0xff] }
 0x129   :  { %v446_v15 = vpop.f32.mrf.mxu1  ;;  %v684_v18 = vpop.f32.mrf.mxu0  ;;  %3195 = vmatmul.mubr.msk.bf16.gmra.mxu1 %vm133_vm1, %v1349_v7  ;;  %3251 = vmatmul.mubr.msk.bf16.gmra.mxu0 %vm133_vm1, %v1619_v21 }
 0x12a   :  { %v447_v30 = vadd.f32 %v446_v15, %v4253_v58  ;;  %v4402_v43 = vadd.f32 %v684_v18, %v439_v51  ;;  %3198 = vmatprep.mubr.msk.bf16.mxu1 %vm3486_vm0, %v3485_v1  ;;  %3254 = vmatprep.mubr.msk.bf16.mxu0 %vm3486_vm0, %v3485_v1 }
 0x12b   :  { %v2964_v20 = vpop.f32.mrf.mxu1  ;;  %v3020_v4 = vpop.f32.mrf.mxu0 }
 0x12c   :  { %v1335_v4 = vld [vmem:[%s4997_s0 + $0x7c] sm:$0xff] }
 0x12d   :  { %v449_v29 = vpop.f32.mrf.mxu1  ;;  %v687_v58 = vpop.f32.mrf.mxu0 }
 0x12e   :  { %v450_v40 = vadd.f32 %v449_v29, %v4269_v8  ;;  %v4415_v47 = vadd.f32 %v687_v58, %v442_v10  ;;  %v1331_v8 = vld [vmem:[%s4997_s0 + $0x5c] sm:$0xff] }
 0x12f   :  { %v2965_v48 = vpop.f32.mrf.mxu1  ;;  %v3021_v49 = vpop.f32.mrf.mxu0  ;;  %v1351_v45 = vpack.c.bf16 %v1332_v50, %v1331_v8  ;;  %v1621_v17 = vpack.c.bf16 %v1331_v8, %v1330_v19 }
 0x130   :  { %v1623_v49 = vpack.c.bf16 %v1335_v4, %v1334_v46 }
 0x131   :  { %v454_v56 = vpop.f32.mrf.mxu1  ;;  %v692_v38 = vpop.f32.mrf.mxu0  ;;  %3199 = vmatmul.mubr.msk.bf16.gmra.mxu1 %vm133_vm1, %v1350_v35  ;;  %3255 = vmatmul.mubr.msk.bf16.gmra.mxu0 %vm133_vm1, %v1620_v41 }
 0x132   :  { %v455_v39 = vadd.f32 %v454_v56, %v4273_v16  ;;  %v4420_v22 = vadd.f32 %v692_v38, %v447_v30  ;;  %3202 = vmatprep.mubr.msk.bf16.mxu1 %vm3486_vm0, %v3485_v1  ;;  %3258 = vmatprep.mubr.msk.bf16.mxu0 %vm3486_vm0, %v3485_v1 }
 0x133   :  { %v2968_v13 = vpop.f32.mrf.mxu1  ;;  %v3024_v60 = vpop.f32.mrf.mxu0 }
 0x135   :  { %v457_v44 = vpop.f32.mrf.mxu1  ;;  %v695_v16 = vpop.f32.mrf.mxu0 }
 0x136   :  { %v458_v25 = vadd.f32 %v457_v44, %v4291_v23  ;;  %v4433_v0 = vadd.f32 %v695_v16, %v450_v40  ;;  %v1333_v23 = vld [vmem:[%s4997_s0 + $0x6c] sm:$0xff] }
 0x137   :  { %v2969_v51 = vpop.f32.mrf.mxu1  ;;  %v3025_v3 = vpop.f32.mrf.mxu0  ;;  %v1352_v10 = vpack.c.bf16 %v1334_v46, %v1333_v23  ;;  %v1622_v11 = vpack.c.bf16 %v1333_v23, %v1332_v50 }
 0x139   :  { %v462_v6 = vpop.f32.mrf.mxu1  ;;  %v700_v57 = vpop.f32.mrf.mxu0  ;;  %3203 = vmatmul.mubr.msk.bf16.gmra.mxu1 %vm133_vm1, %v1351_v45  ;;  %3259 = vmatmul.mubr.msk.bf16.gmra.mxu0 %vm133_vm1, %v1621_v17 }
 0x13a   :  { %v4437_v26 = vadd.f32 %v700_v57, %v455_v39  ;;  %3206 = vmatprep.mubr.msk.bf16.mxu1 %vm3486_vm0, %v3485_v1  ;;  %3262 = vmatprep.mubr.msk.bf16.mxu0 %vm3486_vm0, %v3485_v1  ;;  %v463_v30 = vadd.f32 %v462_v6, %v4139_v5  ;;  %v1336_v5 = vld [vmem:[%s4997_s0 + $0x84] sm:$0xff] }
 0x13b   :  { %v2972_v33 = vpop.f32.mrf.mxu1  ;;  %v3028_v31 = vpop.f32.mrf.mxu0  ;;  %v1353_v48 = vpack.c.bf16 %v1336_v5, %v1335_v4 }
 0x13d   :  { %v465_v7 = vpop.f32.mrf.mxu1  ;;  %v703_v21 = vpop.f32.mrf.mxu0 }
 0x13e   :  { %v4449_v12 = vadd.f32 %v703_v21, %v458_v25  ;;  %v466_v35 = vadd.f32 %v465_v7, %v4158_v24  ;;  %v1337_v24 = vld [vmem:[%s4997_s0 + $0x8c] sm:$0xff] }
 0x13f   :  { %v2973_v15 = vpop.f32.mrf.mxu1  ;;  %v3029_v18 = vpop.f32.mrf.mxu0  ;;  %v1624_v3 = vpack.c.bf16 %v1337_v24, %v1336_v5 }
 0x141   :  { %v470_v52 = vpop.f32.mrf.mxu1  ;;  %v708_v19 = vpop.f32.mrf.mxu0  ;;  %3207 = vmatmul.mubr.msk.bf16.gmra.mxu1 %vm133_vm1, %v1352_v10  ;;  %3263 = vmatmul.mubr.msk.bf16.gmra.mxu0 %vm133_vm1, %v1622_v11 }
 0x142   :  { %v4454_v20 = vadd.f32 %v708_v19, %v463_v30  ;;  %3210 = vmatprep.mubr.msk.bf16.mxu1 %vm3486_vm0, %v3485_v1  ;;  %3266 = vmatprep.mubr.msk.bf16.mxu0 %vm3486_vm0, %v3485_v1  ;;  %v471_v8 = vadd.f32 %v470_v52, %v4162_v14  ;;  %v1338_v14 = vld [vmem:[%s4997_s0 + $0x94] sm:$0xff] }
 0x143   :  { %v2976_v29 = vpop.f32.mrf.mxu1  ;;  %v3032_v58 = vpop.f32.mrf.mxu0  ;;  %v1354_v51 = vpack.c.bf16 %v1338_v14, %v1337_v24 }
 0x145   :  { %v473_v41 = vpop.f32.mrf.mxu1  ;;  %v711_v40 = vpop.f32.mrf.mxu0 }
 0x146   :  { %v4467_v56 = vadd.f32 %v711_v40, %v466_v35  ;;  %v474_v45 = vadd.f32 %v473_v41, %v4181_v32  ;;  %v1339_v32 = vld [vmem:[%s4997_s0 + $0x9c] sm:$0xff] }
 0x147   :  { %v2977_v38 = vpop.f32.mrf.mxu1  ;;  %v3033_v39 = vpop.f32.mrf.mxu0  ;;  %v1625_v52 = vpack.c.bf16 %v1339_v32, %v1338_v14 }
 0x149   :  { %v478_v50 = vpop.f32.mrf.mxu1  ;;  %v716_v13 = vpop.f32.mrf.mxu0  ;;  %3211 = vmatmul.mubr.msk.bf16.gmra.mxu1 %vm133_vm1, %v1353_v48  ;;  %3267 = vmatmul.mubr.msk.bf16.gmra.mxu0 %vm133_vm1, %v1623_v49 }
 0x14a   :  { %v4472_v60 = vadd.f32 %v716_v13, %v471_v8  ;;  %3214 = vmatprep.mubr.msk.bf16.mxu1 %vm3486_vm0, %v3485_v1  ;;  %3270 = vmatprep.mubr.msk.bf16.mxu0 %vm3486_vm0, %v3485_v1  ;;  %v479_v46 = vadd.f32 %v478_v50, %v4185_v28  ;;  %v1340_v28 = vld [vmem:[%s4997_s0 + $0xa4] sm:$0xff] }
 0x14b   :  { %v2980_v44 = vpop.f32.mrf.mxu1  ;;  %v3036_v16 = vpop.f32.mrf.mxu0  ;;  %v1355_v30 = vpack.c.bf16 %v1340_v28, %v1339_v32 }
 0x14d   :  { %v481_v17 = vpop.f32.mrf.mxu1  ;;  %v719_v25 = vpop.f32.mrf.mxu0 }
 0x14e   :  { %v4485_v6 = vadd.f32 %v719_v25, %v474_v45  ;;  %v482_v11 = vadd.f32 %v481_v17, %v4204_v42  ;;  %v1341_v42 = vld [vmem:[%s4997_s0 + $0xac] sm:$0xff] }
 0x14f   :  { %v2981_v57 = vpop.f32.mrf.mxu1  ;;  %v3037_v23 = vpop.f32.mrf.mxu0  ;;  %v1626_v50 = vpack.c.bf16 %v1341_v42, %v1340_v28 }
 0x151   :  { %v486_v33 = vpop.f32.mrf.mxu1  ;;  %v724_v31 = vpop.f32.mrf.mxu0  ;;  %3215 = vmatmul.mubr.msk.bf16.gmra.mxu1 %vm133_vm1, %v1354_v51  ;;  %3271 = vmatmul.mubr.msk.bf16.gmra.mxu0 %vm133_vm1, %v1624_v3 }
 0x152   :  { %v4490_v7 = vadd.f32 %v724_v31, %v479_v46  ;;  %3218 = vmatprep.mubr.msk.bf16.mxu1 %vm3486_vm0, %v3485_v1  ;;  %3274 = vmatprep.mubr.msk.bf16.mxu0 %vm3486_vm0, %v3485_v1  ;;  %v487_v29 = vadd.f32 %v486_v33, %v4208_v37  ;;  %v1342_v37 = vld [vmem:[%s4997_s0 + $0xb4] sm:$0xff] }
 0x153   :  { %v2984_v21 = vpop.f32.mrf.mxu1  ;;  %v3040_v10 = vpop.f32.mrf.mxu0  ;;  %v1356_v8 = vpack.c.bf16 %v1342_v37, %v1341_v42 }
 0x155   :  { %v489_v15 = vpop.f32.mrf.mxu1  ;;  %v727_v18 = vpop.f32.mrf.mxu0 }
 0x156   :  { %v4503_v19 = vadd.f32 %v727_v18, %v482_v11  ;;  %v490_v49 = vadd.f32 %v489_v15, %v4227_v55  ;;  %v1343_v55 = vld [vmem:[%s4997_s0 + $0xbc] sm:$0xff] }
 0x157   :  { %v2985_v4 = vpop.f32.mrf.mxu1  ;;  %v3041_v5 = vpop.f32.mrf.mxu0  ;;  %v1627_v33 = vpack.c.bf16 %v1343_v55, %v1342_v37 }
 0x159   :  { %v494_v58 = vpop.f32.mrf.mxu1  ;;  %v732_v35 = vpop.f32.mrf.mxu0  ;;  %3219 = vmatmul.mubr.msk.bf16.gmra.mxu1 %vm133_vm1, %v1355_v30  ;;  %3275 = vmatmul.mubr.msk.bf16.gmra.mxu0 %vm133_vm1, %v1625_v52 }
 0x15a   :  { %v4508_v41 = vadd.f32 %v732_v35, %v487_v29  ;;  %3222 = vmatprep.mubr.msk.bf16.mxu1 %vm3486_vm0, %v3485_v1  ;;  %3278 = vmatprep.mubr.msk.bf16.mxu0 %vm3486_vm0, %v3485_v1  ;;  %v495_v44 = vadd.f32 %v494_v58, %v4233_v62  ;;  %v1344_v62 = vld [vmem:[%s4997_s0 + $0xc4] sm:$0xff] }
 0x15b   :  { %v2988_v40 = vpop.f32.mrf.mxu1  ;;  %v3044_v48 = vpop.f32.mrf.mxu0  ;;  %v1357_v46 = vpack.c.bf16 %v1344_v62, %v1343_v55 }
 0x15d   :  { %v497_v38 = vpop.f32.mrf.mxu1  ;;  %v735_v39 = vpop.f32.mrf.mxu0 }
 0x15e   :  { %v4521_v13 = vadd.f32 %v735_v39, %v490_v49  ;;  %v498_v3 = vadd.f32 %v497_v38, %v4249_v53  ;;  %v1863_v49 = vld [vmem:[%s4997_s0 + $0x15] sm:$0xff] }
 0x15f   :  { %v2989_v24 = vpop.f32.mrf.mxu1  ;;  %v3045_v14 = vpop.f32.mrf.mxu0 }
 0x161   :  { %v502_v16 = vpop.f32.mrf.mxu1  ;;  %v740_v45 = vpop.f32.mrf.mxu0  ;;  %3223 = vmatmul.mubr.msk.bf16.gmra.mxu1 %vm133_vm1, %v1356_v8  ;;  %3279 = vmatmul.mubr.msk.bf16.gmra.mxu0 %vm133_vm1, %v1626_v50 }
 0x162   :  { %v4526_v17 = vadd.f32 %v740_v45, %v495_v44  ;;  %3226 = vmatprep.mubr.msk.bf16.mxu1 %vm3486_vm0, %v3485_v1  ;;  %3282 = vmatprep.mubr.msk.bf16.mxu0 %vm3486_vm0, %v3485_v1  ;;  %v503_v21 = vadd.f32 %v502_v16, %v4255_v63  ;;  %v1345_v63 = vld [vmem:[%s4997_s0 + $0xcc] sm:$0xff] }
 0x163   :  { %v2992_v25 = vpop.f32.mrf.mxu1  ;;  %v3048_v51 = vpop.f32.mrf.mxu0  ;;  %v1358_v5 = vpack.c.bf16 %v1345_v63, %v1345_v63  ;;  %v1628_v29 = vpack.c.bf16 %v1345_v63, %v1344_v62 }
 0x164   :  { %v1865_v51 = vld [vmem:[%s4997_s0 + $0x25] sm:$0xff] }
 0x165   :  { %v505_v57 = vpop.f32.mrf.mxu1  ;;  %v743_v23 = vpop.f32.mrf.mxu0 }
 0x166   :  { %v4539_v31 = vadd.f32 %v743_v23, %v498_v3  ;;  %v2134_v23 = vld [vmem:[%s4997_s0 + $0x16] sm:$0xff] }
 0x167   :  { %v2993_v32 = vpop.f32.mrf.mxu1  ;;  %v3049_v28 = vpop.f32.mrf.mxu0 }
 0x169   :  { %v748_v10 = vpop.f32.mrf.mxu0  ;;  %v923_v11 = vpop.f32.mrf.mxu1  ;;  %3227 = vmatmul.mubr.msk.bf16.gmra.mxu1 %vm133_vm1, %v1357_v46  ;;  %3283 = vmatmul.mubr.msk.bf16.gmra.mxu0 %vm133_vm1, %v1627_v33 }
 0x16a   :  { %v4544_v15 = vadd.f32 %v748_v10, %v503_v21  ;;  %v1025_v53 = vadd.f32 %v923_v11, %v4297_v59  ;;  %3230 = vmatprep.mubr.msk.bf16.mxu1 %vm3486_vm0, %v3485_v1  ;;  %3286 = vmatprep.mubr.msk.bf16.mxu0 %vm3486_vm0, %v3485_v1 }
 0x16b   :  { %v3052_v18 = vpop.f32.mrf.mxu0  ;;  %v3064_v30 = vpop.f32.mrf.mxu1 }
 0x16d   :  { %v751_v52 = vpop.f32.mrf.mxu0  ;;  %v926_v4 = vpop.f32.mrf.mxu1 }
 0x16e   :  { %v1026_v58 = vadd.f32 %v926_v4, %v4313_v2  ;;  %v1616_v2 = vld [vmem:[%s4997_s0 + $0xd4] sm:$0xff] }
 0x16f   :  { %v3053_v35 = vpop.f32.mrf.mxu0  ;;  %v3065_v59 = vpop.f32.mrf.mxu1  ;;  %v1629_v24 = vpack.c.bf16 %v1616_v2, %v1616_v2  ;;  %v1867_v4 = vld [vmem:[%s4997_s0 + $0x35] sm:$0xff] }
 0x171   :  { %v931_v42 = vpop.f32.mrf.mxu1  ;;  %v1194_v37 = vpop.f32.mrf.mxu0  ;;  %3231 = vmatmul.mubr.msk.bf16.gmra.mxu1 %vm133_vm1, %v1358_v5  ;;  %3287 = vmatmul.mubr.msk.bf16.gmra.mxu0 %vm133_vm1, %v1628_v29 }
 0x172   :  { %v1027_v40 = vadd.f32 %v931_v42, %v4321_v9  ;;  %v4558_v48 = vadd.f32 %v1194_v37, %v1025_v53  ;;  %3290 = vmatprep.mubr.msk.bf16.mxu0 %vm3486_vm0, %v3485_v1  ;;  %3302 = vmatprep.mubr.msk.bf16.mxu1 %vm3486_vm0, %v3485_v1  ;;  %v1864_v9 = vld [vmem:[%s4997_s0 + $0x1d] sm:$0xff] }
 0x173   :  { %v3068_v38 = vpop.f32.mrf.mxu1  ;;  %v3124_v39 = vpop.f32.mrf.mxu0  ;;  %v1888_v14 = vpack.c.bf16 %v1864_v9, %v1863_v49 }
 0x175   :  { %v934_v8 = vpop.f32.mrf.mxu1  ;;  %v1197_v50 = vpop.f32.mrf.mxu0 }
 0x176   :  { %v1028_v44 = vadd.f32 %v934_v8, %v4338_v34  ;;  %v4574_v16 = vadd.f32 %v1197_v50, %v1026_v58  ;;  %v1866_v34 = vld [vmem:[%s4997_s0 + $0x2d] sm:$0xff] }
 0x177   :  { %v3069_v45 = vpop.f32.mrf.mxu1  ;;  %v3125_v55 = vpop.f32.mrf.mxu0  ;;  %v1889_v21 = vpack.c.bf16 %v1866_v34, %v1865_v51  ;;  %v2136_v58 = vld [vmem:[%s4997_s0 + $0x26] sm:$0xff] }
 0x178   :  { %v2138_v45 = vld [vmem:[%s4997_s0 + $0x36] sm:$0xff] }
 0x179   :  { %v939_v62 = vpop.f32.mrf.mxu1  ;;  %v1202_v25 = vpop.f32.mrf.mxu0  ;;  %3291 = vmatmul.mubr.msk.bf16.gmra.mxu0 %vm133_vm1, %v1629_v24  ;;  %3303 = vmatmul.mubr.msk.bf16.vlgmr.msra.gmra.mxu1 %vm133_vm1, %v1888_v14  ;;  %v1869_v24 = vld [vmem:[%s4997_s0 + $0x45] sm:$0xff] }
 0x17a   :  { %v1029_v3 = vadd.f32 %v939_v62, %v4350_v36  ;;  %v4582_v57 = vadd.f32 %v1202_v25, %v1027_v40  ;;  %3306 = vmatprep.mubr.msk.bf16.mxu1 %vm3486_vm0, %v3485_v1  ;;  %3362 = vmatprep.mubr.msk.bf16.mxu0 %vm3486_vm0, %v3485_v1  ;;  %v2135_v36 = vld [vmem:[%s4997_s0 + $0x1e] sm:$0xff] }
 0x17b   :  { %v3072_v46 = vpop.f32.mrf.mxu1  ;;  %v3128_v33 = vpop.f32.mrf.mxu0  ;;  %v2159_v10 = vpack.c.bf16 %v2135_v36, %v2134_v23 }
 0x17d   :  { %v942_v32 = vpop.f32.mrf.mxu1  ;;  %v1205_v28 = vpop.f32.mrf.mxu0 }
 0x17e   :  { %v1030_v11 = vadd.f32 %v942_v32, %v4371_v61  ;;  %v4598_v53 = vadd.f32 %v1205_v28, %v1028_v44  ;;  %v1868_v61 = vld [vmem:[%s4997_s0 + $0x3d] sm:$0xff] }
 0x17f   :  { %v3073_v63 = vpop.f32.mrf.mxu1  ;;  %v3129_v18 = vpop.f32.mrf.mxu0  ;;  %v1890_v40 = vpack.c.bf16 %v1868_v61, %v1867_v4 }
 0x180   :  { %v2140_v63 = vld [vmem:[%s4997_s0 + $0x46] sm:$0xff] }
 0x181   :  { %v947_v30 = vpop.f32.mrf.mxu1  ;;  %v1210_v52 = vpop.f32.mrf.mxu0  ;;  %3307 = vmatmul.mubr.msk.bf16.gmra.mxu1 %vm133_vm1, %v1889_v21  ;;  %3363 = vmatmul.mubr.msk.bf16.vlgmr.msra.gmra.mxu0 %vm133_vm1, %v2159_v10  ;;  %v1871_v21 = vld [vmem:[%s4997_s0 + $0x55] sm:$0xff] }
 0x182   :  { %v1031_v5 = vadd.f32 %v947_v30, %v4380_v54  ;;  %v4606_v29 = vadd.f32 %v1210_v52, %v1029_v3  ;;  %3310 = vmatprep.mubr.msk.bf16.mxu1 %vm3486_vm0, %v3485_v1  ;;  %3366 = vmatprep.mubr.msk.bf16.mxu0 %vm3486_vm0, %v3485_v1  ;;  %v2137_v54 = vld [vmem:[%s4997_s0 + $0x2e] sm:$0xff] }
 0x183   :  { %v3076_v35 = vpop.f32.mrf.mxu1  ;;  %v3132_v59 = vpop.f32.mrf.mxu0  ;;  %v2160_v2 = vpack.c.bf16 %v2137_v54, %v2136_v58 }
 0x185   :  { %v950_v42 = vpop.f32.mrf.mxu1  ;;  %v1213_v37 = vpop.f32.mrf.mxu0 }
 0x186   :  { %v1032_v49 = vadd.f32 %v950_v42, %v4397_v27  ;;  %v4622_v9 = vadd.f32 %v1213_v37, %v1030_v11  ;;  %v1870_v27 = vld [vmem:[%s4997_s0 + $0x4d] sm:$0xff] }
 0x187   :  { %v3077_v38 = vpop.f32.mrf.mxu1  ;;  %v3133_v39 = vpop.f32.mrf.mxu0  ;;  %v1891_v3 = vpack.c.bf16 %v1870_v27, %v1869_v24 }
 0x188   :  { %v2142_v38 = vld [vmem:[%s4997_s0 + $0x56] sm:$0xff] }
 0x189   :  { %v955_v8 = vpop.f32.mrf.mxu1  ;;  %v1218_v50 = vpop.f32.mrf.mxu0  ;;  %3311 = vmatmul.mubr.msk.bf16.gmra.mxu1 %vm133_vm1, %v1890_v40  ;;  %3367 = vmatmul.mubr.msk.bf16.gmra.mxu0 %vm133_vm1, %v2160_v2  ;;  %v1873_v40 = vld [vmem:[%s4997_s0 + $0x65] sm:$0xff] }
 0x18a   :  { %v1033_v14 = vadd.f32 %v955_v8, %v4402_v43  ;;  %v4630_v44 = vadd.f32 %v1218_v50, %v1031_v5  ;;  %3314 = vmatprep.mubr.msk.bf16.mxu1 %vm3486_vm0, %v3485_v1  ;;  %3370 = vmatprep.mubr.msk.bf16.mxu0 %vm3486_vm0, %v3485_v1  ;;  %v2139_v43 = vld [vmem:[%s4997_s0 + $0x3e] sm:$0xff] }
 0x18b   :  { %v3080_v55 = vpop.f32.mrf.mxu1  ;;  %v3136_v62 = vpop.f32.mrf.mxu0  ;;  %v2161_v34 = vpack.c.bf16 %v2139_v43, %v2138_v45 }
 0x18d   :  { %v958_v25 = vpop.f32.mrf.mxu1  ;;  %v1221_v51 = vpop.f32.mrf.mxu0 }
 0x18e   :  { %v1034_v23 = vadd.f32 %v958_v25, %v4415_v47  ;;  %v4646_v36 = vadd.f32 %v1221_v51, %v1032_v49  ;;  %v1872_v47 = vld [vmem:[%s4997_s0 + $0x5d] sm:$0xff] }
 0x18f   :  { %v3081_v46 = vpop.f32.mrf.mxu1  ;;  %v3137_v33 = vpop.f32.mrf.mxu0  ;;  %v1892_v5 = vpack.c.bf16 %v1872_v47, %v1871_v21 }
 0x190   :  { %v2144_v46 = vld [vmem:[%s4997_s0 + $0x66] sm:$0xff] }
 0x191   :  { %v963_v32 = vpop.f32.mrf.mxu1  ;;  %v1226_v28 = vpop.f32.mrf.mxu0  ;;  %3315 = vmatmul.mubr.msk.bf16.gmra.mxu1 %vm133_vm1, %v1891_v3  ;;  %3371 = vmatmul.mubr.msk.bf16.gmra.mxu0 %vm133_vm1, %v2161_v34  ;;  %v1875_v3 = vld [vmem:[%s4997_s0 + $0x75] sm:$0xff] }
 0x192   :  { %v1035_v10 = vadd.f32 %v963_v32, %v4420_v22  ;;  %v4654_v11 = vadd.f32 %v1226_v28, %v1033_v14  ;;  %3318 = vmatprep.mubr.msk.bf16.mxu1 %vm3486_vm0, %v3485_v1  ;;  %3374 = vmatprep.mubr.msk.bf16.mxu0 %vm3486_vm0, %v3485_v1  ;;  %v2141_v22 = vld [vmem:[%s4997_s0 + $0x4e] sm:$0xff] }
 0x193   :  { %v3084_v18 = vpop.f32.mrf.mxu1  ;;  %v3140_v30 = vpop.f32.mrf.mxu0  ;;  %v2162_v61 = vpack.c.bf16 %v2141_v22, %v2140_v63 }
 0x195   :  { %v966_v52 = vpop.f32.mrf.mxu1  ;;  %v1229_v4 = vpop.f32.mrf.mxu0 }
 0x196   :  { %v1036_v58 = vadd.f32 %v966_v52, %v4433_v0  ;;  %v4670_v54 = vadd.f32 %v1229_v4, %v1034_v23  ;;  %v1874_v0 = vld [vmem:[%s4997_s0 + $0x6d] sm:$0xff] }
 0x197   :  { %v3085_v35 = vpop.f32.mrf.mxu1  ;;  %v3141_v59 = vpop.f32.mrf.mxu0  ;;  %v1893_v14 = vpack.c.bf16 %v1874_v0, %v1873_v40 }
 0x198   :  { %v2146_v35 = vld [vmem:[%s4997_s0 + $0x76] sm:$0xff] }
 0x199   :  { %v971_v42 = vpop.f32.mrf.mxu1  ;;  %v1234_v37 = vpop.f32.mrf.mxu0  ;;  %3319 = vmatmul.mubr.msk.bf16.gmra.mxu1 %vm133_vm1, %v1892_v5  ;;  %3375 = vmatmul.mubr.msk.bf16.gmra.mxu0 %vm133_vm1, %v2162_v61  ;;  %v1877_v5 = vld [vmem:[%s4997_s0 + $0x85] sm:$0xff] }
 0x19a   :  { %v1037_v2 = vadd.f32 %v971_v42, %v4437_v26  ;;  %v4678_v49 = vadd.f32 %v1234_v37, %v1035_v10  ;;  %3322 = vmatprep.mubr.msk.bf16.mxu1 %vm3486_vm0, %v3485_v1  ;;  %3378 = vmatprep.mubr.msk.bf16.mxu0 %vm3486_vm0, %v3485_v1  ;;  %v2143_v26 = vld [vmem:[%s4997_s0 + $0x5e] sm:$0xff] }
 0x19b   :  { %v3088_v39 = vpop.f32.mrf.mxu1  ;;  %v3144_v8 = vpop.f32.mrf.mxu0  ;;  %v2163_v27 = vpack.c.bf16 %v2143_v26, %v2142_v38 }
 0x19d   :  { %v974_v50 = vpop.f32.mrf.mxu1  ;;  %v1237_v24 = vpop.f32.mrf.mxu0 }
 0x19e   :  { %v1038_v45 = vadd.f32 %v974_v50, %v4449_v12  ;;  %v4694_v43 = vadd.f32 %v1237_v24, %v1036_v58  ;;  %v1876_v12 = vld [vmem:[%s4997_s0 + $0x7d] sm:$0xff] }
 0x19f   :  { %v3089_v55 = vpop.f32.mrf.mxu1  ;;  %v3145_v62 = vpop.f32.mrf.mxu0  ;;  %v1894_v10 = vpack.c.bf16 %v1876_v12, %v1875_v3 }
 0x1a0   :  { %v2148_v55 = vld [vmem:[%s4997_s0 + $0x86] sm:$0xff] }
 0x1a1   :  { %v979_v25 = vpop.f32.mrf.mxu1  ;;  %v1242_v51 = vpop.f32.mrf.mxu0  ;;  %3323 = vmatmul.mubr.msk.bf16.gmra.mxu1 %vm133_vm1, %v1893_v14  ;;  %3379 = vmatmul.mubr.msk.bf16.gmra.mxu0 %vm133_vm1, %v2163_v27  ;;  %v1879_v14 = vld [vmem:[%s4997_s0 + $0x95] sm:$0xff] }
 0x1a2   :  { %v1039_v34 = vadd.f32 %v979_v25, %v4454_v20  ;;  %v4702_v23 = vadd.f32 %v1242_v51, %v1037_v2  ;;  %3326 = vmatprep.mubr.msk.bf16.mxu1 %vm3486_vm0, %v3485_v1  ;;  %3382 = vmatprep.mubr.msk.bf16.mxu0 %vm3486_vm0, %v3485_v1  ;;  %v2145_v20 = vld [vmem:[%s4997_s0 + $0x6e] sm:$0xff] }
 0x1a3   :  { %v3092_v33 = vpop.f32.mrf.mxu1  ;;  %v3148_v32 = vpop.f32.mrf.mxu0  ;;  %v2164_v47 = vpack.c.bf16 %v2145_v20, %v2144_v46 }
 0x1a5   :  { %v982_v28 = vpop.f32.mrf.mxu1  ;;  %v1245_v21 = vpop.f32.mrf.mxu0 }
 0x1a6   :  { %v1040_v63 = vadd.f32 %v982_v28, %v4467_v56  ;;  %v4718_v22 = vadd.f32 %v1245_v21, %v1038_v45  ;;  %v1878_v56 = vld [vmem:[%s4997_s0 + $0x8d] sm:$0xff] }
 0x1a7   :  { %v3093_v18 = vpop.f32.mrf.mxu1  ;;  %v3149_v30 = vpop.f32.mrf.mxu0  ;;  %v1895_v2 = vpack.c.bf16 %v1878_v56, %v1877_v5 }
 0x1a8   :  { %v2150_v18 = vld [vmem:[%s4997_s0 + $0x96] sm:$0xff] }
 0x1a9   :  { %v987_v52 = vpop.f32.mrf.mxu1  ;;  %v1250_v4 = vpop.f32.mrf.mxu0  ;;  %3327 = vmatmul.mubr.msk.bf16.gmra.mxu1 %vm133_vm1, %v1894_v10  ;;  %3383 = vmatmul.mubr.msk.bf16.gmra.mxu0 %vm133_vm1, %v2164_v47  ;;  %v1881_v10 = vld [vmem:[%s4997_s0 + $0xa5] sm:$0xff] }
 0x1aa   :  { %v1041_v61 = vadd.f32 %v987_v52, %v4472_v60  ;;  %v4726_v58 = vadd.f32 %v1250_v4, %v1039_v34  ;;  %3330 = vmatprep.mubr.msk.bf16.mxu1 %vm3486_vm0, %v3485_v1  ;;  %3386 = vmatprep.mubr.msk.bf16.mxu0 %vm3486_vm0, %v3485_v1  ;;  %v2147_v60 = vld [vmem:[%s4997_s0 + $0x7e] sm:$0xff] }
 0x1ab   :  { %v3096_v59 = vpop.f32.mrf.mxu1  ;;  %v3152_v42 = vpop.f32.mrf.mxu0  ;;  %v2165_v0 = vpack.c.bf16 %v2147_v60, %v2146_v35 }
 0x1ad   :  { %v990_v37 = vpop.f32.mrf.mxu1  ;;  %v1253_v40 = vpop.f32.mrf.mxu0 }
 0x1ae   :  { %v1042_v38 = vadd.f32 %v990_v37, %v4485_v6  ;;  %v4742_v26 = vadd.f32 %v1253_v40, %v1040_v63  ;;  %v1880_v6 = vld [vmem:[%s4997_s0 + $0x9d] sm:$0xff] }
 0x1af   :  { %v3097_v39 = vpop.f32.mrf.mxu1  ;;  %v3153_v8 = vpop.f32.mrf.mxu0  ;;  %v1896_v34 = vpack.c.bf16 %v1880_v6, %v1879_v14 }
 0x1b0   :  { %v2152_v39 = vld [vmem:[%s4997_s0 + $0xa6] sm:$0xff] }
 0x1b1   :  { %v995_v50 = vpop.f32.mrf.mxu1  ;;  %v1258_v24 = vpop.f32.mrf.mxu0  ;;  %3331 = vmatmul.mubr.msk.bf16.gmra.mxu1 %vm133_vm1, %v1895_v2  ;;  %3387 = vmatmul.mubr.msk.bf16.gmra.mxu0 %vm133_vm1, %v2165_v0  ;;  %v1883_v2 = vld [vmem:[%s4997_s0 + $0xb5] sm:$0xff] }
 0x1b2   :  { %v1043_v27 = vadd.f32 %v995_v50, %v4490_v7  ;;  %v4750_v45 = vadd.f32 %v1258_v24, %v1041_v61  ;;  %3334 = vmatprep.mubr.msk.bf16.mxu1 %vm3486_vm0, %v3485_v1  ;;  %3390 = vmatprep.mubr.msk.bf16.mxu0 %vm3486_vm0, %v3485_v1  ;;  %v2149_v7 = vld [vmem:[%s4997_s0 + $0x8e] sm:$0xff] }
 0x1b3   :  { %v3100_v62 = vpop.f32.mrf.mxu1  ;;  %v3156_v25 = vpop.f32.mrf.mxu0  ;;  %v2166_v12 = vpack.c.bf16 %v2149_v7, %v2148_v55 }
 0x1b5   :  { %v998_v51 = vpop.f32.mrf.mxu1  ;;  %v1261_v3 = vpop.f32.mrf.mxu0 }
 0x1b6   :  { %v1044_v46 = vadd.f32 %v998_v51, %v4503_v19  ;;  %v4766_v20 = vadd.f32 %v1261_v3, %v1042_v38  ;;  %v1882_v19 = vld [vmem:[%s4997_s0 + $0xad] sm:$0xff] }
 0x1b7   :  { %v3101_v33 = vpop.f32.mrf.mxu1  ;;  %v3157_v32 = vpop.f32.mrf.mxu0  ;;  %v1897_v61 = vpack.c.bf16 %v1882_v19, %v1881_v10 }
 0x1b8   :  { %v2154_v33 = vld [vmem:[%s4997_s0 + $0xb6] sm:$0xff] }
 0x1b9   :  { %v1003_v28 = vpop.f32.mrf.mxu1  ;;  %v1266_v21 = vpop.f32.mrf.mxu0  ;;  %3335 = vmatmul.mubr.msk.bf16.gmra.mxu1 %vm133_vm1, %v1896_v34  ;;  %3391 = vmatmul.mubr.msk.bf16.gmra.mxu0 %vm133_vm1, %v2166_v12  ;;  %v1885_v34 = vld [vmem:[%s4997_s0 + $0xc5] sm:$0xff] }
 0x1ba   :  { %v1045_v47 = vadd.f32 %v1003_v28, %v4508_v41  ;;  %v4774_v63 = vadd.f32 %v1266_v21, %v1043_v27  ;;  %3338 = vmatprep.mubr.msk.bf16.mxu1 %vm3486_vm0, %v3485_v1  ;;  %3394 = vmatprep.mubr.msk.bf16.mxu0 %vm3486_vm0, %v3485_v1  ;;  %v2151_v41 = vld [vmem:[%s4997_s0 + $0x9e] sm:$0xff] }
 0x1bb   :  { %v3104_v30 = vpop.f32.mrf.mxu1  ;;  %v3160_v52 = vpop.f32.mrf.mxu0  ;;  %v2167_v56 = vpack.c.bf16 %v2151_v41, %v2150_v18 }
 0x1bd   :  { %v1006_v4 = vpop.f32.mrf.mxu1  ;;  %v1269_v5 = vpop.f32.mrf.mxu0 }
 0x1be   :  { %v1046_v35 = vadd.f32 %v1006_v4, %v4521_v13  ;;  %v4790_v60 = vadd.f32 %v1269_v5, %v1044_v46  ;;  %v1884_v13 = vld [vmem:[%s4997_s0 + $0xbd] sm:$0xff] }
 0x1bf   :  { %v3105_v59 = vpop.f32.mrf.mxu1  ;;  %v3161_v42 = vpop.f32.mrf.mxu0  ;;  %v1898_v27 = vpack.c.bf16 %v1884_v13, %v1883_v2 }
 0x1c0   :  { %v2157_v59 = vld [vmem:[%s4997_s0 + $0xce] sm:$0xff] }
 0x1c1   :  { %v1011_v37 = vpop.f32.mrf.mxu1  ;;  %v1274_v40 = vpop.f32.mrf.mxu0  ;;  %3339 = vmatmul.mubr.msk.bf16.gmra.mxu1 %vm133_vm1, %v1897_v61  ;;  %3395 = vmatmul.mubr.msk.bf16.gmra.mxu0 %vm133_vm1, %v2167_v56  ;;  %v1887_v56 = vld [vmem:[%s4997_s0 + $0xd5] sm:$0xff] }
 0x1c2   :  { %v1047_v0 = vadd.f32 %v1011_v37, %v4526_v17  ;;  %v4798_v38 = vadd.f32 %v1274_v40, %v1045_v47  ;;  %3342 = vmatprep.mubr.msk.bf16.mxu1 %vm3486_vm0, %v3485_v1  ;;  %3398 = vmatprep.mubr.msk.bf16.mxu0 %vm3486_vm0, %v3485_v1  ;;  %v2153_v17 = vld [vmem:[%s4997_s0 + $0xae] sm:$0xff]  ;;  %v1900_v2 = vpack.c.bf16 %v1887_v56, %v1887_v56 }
 0x1c3   :  { %v3108_v8 = vpop.f32.mrf.mxu1  ;;  %v3164_v50 = vpop.f32.mrf.mxu0  ;;  %v2168_v6 = vpack.c.bf16 %v2153_v17, %v2152_v39 }
 0x1c5   :  { %v1014_v24 = vpop.f32.mrf.mxu1  ;;  %v1277_v14 = vpop.f32.mrf.mxu0 }
 0x1c6   :  { %v1048_v55 = vadd.f32 %v1014_v24, %v4539_v31  ;;  %v4814_v7 = vadd.f32 %v1277_v14, %v1046_v35  ;;  %v1886_v31 = vld [vmem:[%s4997_s0 + $0xcd] sm:$0xff] }
 0x1c7   :  { %v3109_v62 = vpop.f32.mrf.mxu1  ;;  %v3165_v25 = vpop.f32.mrf.mxu0  ;;  %v1899_v47 = vpack.c.bf16 %v1886_v31, %v1885_v34  ;;  %v2156_v35 = vld [vmem:[%s4997_s0 + $0xc6] sm:$0xff] }
 0x1c9   :  { %v1019_v51 = vpop.f32.mrf.mxu1  ;;  %v1282_v3 = vpop.f32.mrf.mxu0  ;;  %3343 = vmatmul.mubr.msk.bf16.gmra.mxu1 %vm133_vm1, %v1898_v27  ;;  %3399 = vmatmul.mubr.msk.bf16.gmra.mxu0 %vm133_vm1, %v2168_v6  ;;  %v2158_v27 = vld [vmem:[%s4997_s0 + $0xd6] sm:$0xff] }
 0x1ca   :  { %v1049_v12 = vadd.f32 %v1019_v51, %v4544_v15  ;;  %v4822_v46 = vadd.f32 %v1282_v3, %v1047_v0  ;;  %3346 = vmatprep.mubr.msk.bf16.mxu1 %vm3486_vm0, %v3485_v1  ;;  %3402 = vmatprep.mubr.msk.bf16.mxu0 %vm3486_vm0, %v3485_v1  ;;  %v2155_v15 = vld [vmem:[%s4997_s0 + $0xbe] sm:$0xff]  ;;  %v2170_v0 = vpack.c.bf16 %v2157_v59, %v2156_v35 }
 0x1cb   :  { %v3112_v32 = vpop.f32.mrf.mxu1  ;;  %v3168_v28 = vpop.f32.mrf.mxu0  ;;  %v2169_v19 = vpack.c.bf16 %v2155_v15, %v2154_v33  ;;  %v2171_v25 = vpack.c.bf16 %v2158_v27, %v2158_v27 }
 0x1cd   :  { %v1022_v21 = vpop.f32.mrf.mxu1  ;;  %v1285_v10 = vpop.f32.mrf.mxu0 }
 0x1ce   :  { %v4837_v18 = vadd.f32 %v1285_v10, %v1048_v55 }
 0x1cf   :  { %v3113_v41 = vpop.f32.mrf.mxu1  ;;  %v3169_v30 = vpop.f32.mrf.mxu0 }
 0x1d1   :  { %v1290_v52 = vpop.f32.mrf.mxu0  ;;  %v1465_v4 = vpop.f32.mrf.mxu1  ;;  %3347 = vmatmul.mubr.msk.bf16.gmra.mxu1 %vm133_vm1, %v1899_v47  ;;  %3403 = vmatmul.mubr.msk.bf16.gmra.mxu0 %vm133_vm1, %v2169_v19 }
 0x1d2   :  { %v4841_v5 = vadd.f32 %v1290_v52, %v1049_v12  ;;  %v1567_v61 = vadd.f32 %v1465_v4, %v4558_v48  ;;  %3350 = vmatprep.mubr.msk.bf16.mxu1 %vm3486_vm0, %v3485_v1  ;;  %3406 = vmatprep.mubr.msk.bf16.mxu0 %vm3486_vm0, %v3485_v1 }
 0x1d3   :  { %v3172_v42 = vpop.f32.mrf.mxu0  ;;  %v3184_v48 = vpop.f32.mrf.mxu1 }
 0x1d5   :  { %v1293_v37 = vpop.f32.mrf.mxu0  ;;  %v1468_v40 = vpop.f32.mrf.mxu1 }
 0x1d6   :  { %v1568_v13 = vadd.f32 %v1468_v40, %v4574_v16 }
 0x1d7   :  { %v3173_v39 = vpop.f32.mrf.mxu0  ;;  %v3185_v17 = vpop.f32.mrf.mxu1 }
 0x1d9   :  { %v1473_v8 = vpop.f32.mrf.mxu1  ;;  %v1736_v50 = vpop.f32.mrf.mxu0  ;;  %3351 = vmatmul.mubr.msk.bf16.gmra.mxu1 %vm133_vm1, %v1900_v2  ;;  %3407 = vmatmul.mubr.msk.bf16.gmra.mxu0 %vm133_vm1, %v2170_v0 }
 0x1da   :  { %v1569_v24 = vadd.f32 %v1473_v8, %v4582_v57  ;;  %v4861_v14 = vadd.f32 %v1736_v50, %v1567_v61  ;;  %3410 = vmatprep.mubr.msk.bf16.mxu0 %vm3486_vm0, %v3485_v1 }
 0x1db   :  { %v3188_v16 = vpop.f32.mrf.mxu1  ;;  %v3244_v6 = vpop.f32.mrf.mxu0 }
 0x1dd   :  { %v1476_v55 = vpop.f32.mrf.mxu1  ;;  %v1739_v62 = vpop.f32.mrf.mxu0 }
 0x1de   :  { %v1570_v51 = vadd.f32 %v1476_v55, %v4598_v53  ;;  %v4869_v3 = vadd.f32 %v1739_v62, %v1568_v13 }
 0x1df   :  { %v3189_v34 = vpop.f32.mrf.mxu1  ;;  %v3245_v57 = vpop.f32.mrf.mxu0 }
 0x1e1   :  { %v1481_v12 = vpop.f32.mrf.mxu1  ;;  %v1744_v31 = vpop.f32.mrf.mxu0  ;;  %3411 = vmatmul.mubr.msk.bf16.gmra.mxu0 %vm133_vm1, %v2171_v25 }
 0x1e2   :  { %v1571_v1 = vadd.f32 %v1481_v12, %v4606_v29  ;;  %v4873_v33 = vadd.f32 %v1744_v31, %v1569_v24 }
 0x1e3   :  { %v3192_v15 = vpop.f32.mrf.mxu1  ;;  %v3248_v32 = vpop.f32.mrf.mxu0 }
 0x1e5   :  { %v1484_v28 = vpop.f32.mrf.mxu1  ;;  %v1747_v21 = vpop.f32.mrf.mxu0 }
 0x1e6   :  { %v1572_v10 = vadd.f32 %v1484_v28, %v4622_v9  ;;  %v4876_v47 = vadd.f32 %v1747_v21, %v1570_v51 }
 0x1e7   :  { %v3193_v53 = vpop.f32.mrf.mxu1  ;;  %v3249_v19 = vpop.f32.mrf.mxu0 }
 0x1e9   :  { %v1489_v41 = vpop.f32.mrf.mxu1  ;;  %v1752_v30 = vpop.f32.mrf.mxu0 }
 0x1ea   :  { %v1573_v52 = vadd.f32 %v1489_v41, %v4630_v44  ;;  %v4879_v4 = vadd.f32 %v1752_v30, %v1571_v1 }
 0x1eb   :  { %v3196_v61 = vpop.f32.mrf.mxu1  ;;  %v3252_v29 = vpop.f32.mrf.mxu0 }
 0x1ed   :  { %v1492_v56 = vpop.f32.mrf.mxu1  ;;  %v1755_v35 = vpop.f32.mrf.mxu0 }
 0x1ee   :  { %v1574_v59 = vadd.f32 %v1492_v56, %v4646_v36  ;;  %v4882_v42 = vadd.f32 %v1755_v35, %v1572_v10 }
 0x1ef   :  { %v3197_v48 = vpop.f32.mrf.mxu1  ;;  %v3253_v9 = vpop.f32.mrf.mxu0 }
 0x1f1   :  { %v1497_v37 = vpop.f32.mrf.mxu1  ;;  %v1760_v40 = vpop.f32.mrf.mxu0 }
 0x1f2   :  { %v1575_v2 = vadd.f32 %v1497_v37, %v4654_v11  ;;  %v4885_v0 = vadd.f32 %v1760_v40, %v1573_v52 }
 0x1f3   :  { %v3200_v13 = vpop.f32.mrf.mxu1  ;;  %v3256_v44 = vpop.f32.mrf.mxu0 }
 0x1f5   :  { %v1500_v39 = vpop.f32.mrf.mxu1  ;;  %v1763_v17 = vpop.f32.mrf.mxu0 }
 0x1f6   :  { %v1576_v8 = vadd.f32 %v1500_v39, %v4670_v54  ;;  %v4888_v50 = vadd.f32 %v1763_v17, %v1574_v59 }
 0x1f7   :  { %v3201_v24 = vpop.f32.mrf.mxu1  ;;  %v3257_v36 = vpop.f32.mrf.mxu0 }
 0x1f9   :  { %v1505_v27 = vpop.f32.mrf.mxu1  ;;  %v1768_v16 = vpop.f32.mrf.mxu0 }
 0x1fa   :  { %v1577_v6 = vadd.f32 %v1505_v27, %v4678_v49  ;;  %v4891_v55 = vadd.f32 %v1768_v16, %v1575_v2 }
 0x1fb   :  { %v3204_v62 = vpop.f32.mrf.mxu1  ;;  %v3260_v11 = vpop.f32.mrf.mxu0 }
 0x1fd   :  { %v1508_v25 = vpop.f32.mrf.mxu1  ;;  %v1771_v51 = vpop.f32.mrf.mxu0 }
 0x1fe   :  { %v1578_v34 = vadd.f32 %v1508_v25, %v4694_v43  ;;  %v4894_v57 = vadd.f32 %v1771_v51, %v1576_v8 }
 0x1ff   :  { %v3205_v12 = vpop.f32.mrf.mxu1  ;;  %v3261_v54 = vpop.f32.mrf.mxu0 }
 0x201   :  { %v1513_v31 = vpop.f32.mrf.mxu1  ;;  %v1776_v1 = vpop.f32.mrf.mxu0 }
 0x202   :  { %v1579_v15 = vadd.f32 %v1513_v31, %v4702_v23  ;;  %v4897_v32 = vadd.f32 %v1776_v1, %v1577_v6 }
 0x203   :  { %v3208_v28 = vpop.f32.mrf.mxu1  ;;  %v3264_v49 = vpop.f32.mrf.mxu0 }
 0x205   :  { %v1516_v21 = vpop.f32.mrf.mxu1  ;;  %v1779_v10 = vpop.f32.mrf.mxu0 }
 0x206   :  { %v1580_v53 = vadd.f32 %v1516_v21, %v4718_v22  ;;  %v4900_v19 = vadd.f32 %v1779_v10, %v1578_v34 }
 0x207   :  { %v3209_v41 = vpop.f32.mrf.mxu1  ;;  %v3265_v43 = vpop.f32.mrf.mxu0 }
 0x209   :  { %v1521_v30 = vpop.f32.mrf.mxu1  ;;  %v1784_v52 = vpop.f32.mrf.mxu0 }
 0x20a   :  { %v1581_v61 = vadd.f32 %v1521_v30, %v4726_v58  ;;  %v4903_v29 = vadd.f32 %v1784_v52, %v1579_v15 }
 0x20b   :  { %v3212_v56 = vpop.f32.mrf.mxu1  ;;  %v3268_v23 = vpop.f32.mrf.mxu0 }
 0x20d   :  { %v1524_v35 = vpop.f32.mrf.mxu1  ;;  %v1787_v59 = vpop.f32.mrf.mxu0 }
 0x20e   :  { %v1582_v48 = vadd.f32 %v1524_v35, %v4742_v26  ;;  %v4906_v9 = vadd.f32 %v1787_v59, %v1580_v53 }
 0x20f   :  { %v3213_v37 = vpop.f32.mrf.mxu1  ;;  %v3269_v22 = vpop.f32.mrf.mxu0 }
 0x211   :  { %v1529_v40 = vpop.f32.mrf.mxu1  ;;  %v1792_v2 = vpop.f32.mrf.mxu0 }
 0x212   :  { %v1583_v13 = vadd.f32 %v1529_v40, %v4750_v45  ;;  %v4909_v44 = vadd.f32 %v1792_v2, %v1581_v61 }
 0x213   :  { %v3216_v39 = vpop.f32.mrf.mxu1  ;;  %v3272_v58 = vpop.f32.mrf.mxu0 }
 0x215   :  { %v1532_v17 = vpop.f32.mrf.mxu1  ;;  %v1795_v8 = vpop.f32.mrf.mxu0 }
 0x216   :  { %v1584_v24 = vadd.f32 %v1532_v17, %v4766_v20  ;;  %v4912_v36 = vadd.f32 %v1795_v8, %v1582_v48 }
 0x217   :  { %v3217_v27 = vpop.f32.mrf.mxu1  ;;  %v3273_v26 = vpop.f32.mrf.mxu0 }
 0x219   :  { %v1537_v16 = vpop.f32.mrf.mxu1  ;;  %v1800_v6 = vpop.f32.mrf.mxu0 }
 0x21a   :  { %v1585_v62 = vadd.f32 %v1537_v16, %v4774_v63  ;;  %v4915_v11 = vadd.f32 %v1800_v6, %v1583_v13 }
 0x21b   :  { %v3220_v25 = vpop.f32.mrf.mxu1  ;;  %v3276_v45 = vpop.f32.mrf.mxu0 }
 0x21d   :  { %v1540_v51 = vpop.f32.mrf.mxu1  ;;  %v1803_v34 = vpop.f32.mrf.mxu0 }
 0x21e   :  { %v1586_v12 = vadd.f32 %v1540_v51, %v4790_v60  ;;  %v4918_v54 = vadd.f32 %v1803_v34, %v1584_v24 }
 0x21f   :  { %v3221_v31 = vpop.f32.mrf.mxu1  ;;  %v3277_v20 = vpop.f32.mrf.mxu0 }
 0x221   :  { %v1545_v1 = vpop.f32.mrf.mxu1  ;;  %v1808_v15 = vpop.f32.mrf.mxu0 }
 0x222   :  { %v1587_v28 = vadd.f32 %v1545_v1, %v4798_v38  ;;  %v4921_v49 = vadd.f32 %v1808_v15, %v1585_v62  ;;  %v4943_v15 = vld [vmem:[%s4999_s2] ss:$0 sm:$0xff]  ;;  %s3487_s2 = smov [#allocation2]  }
 0x223   :  { %v3224_v21 = vpop.f32.mrf.mxu1  ;;  %v3280_v63 = vpop.f32.mrf.mxu0  ;;  %s2492_s29 = sshll.u32 %s3487_s2, 4  ;;  %s2493_s29 = int_to_ptr.vmem [resolvable:$true] %s2492_s29 }
 0x224   :  { %s3463_s30 = scalar_lea.vmem %s2493_s29, 3200  ;;  %p3468_p1 = scmp.lt.s32.totalorder %s2493_s29, %s2493_s29 }
 0x225   :  { %v1548_v10 = vpop.f32.mrf.mxu1  ;;  %v1811_v53 = vpop.f32.mrf.mxu0  ;;  %p3464_p0 = scmp.ne.s32.totalorder %s2493_s29, %s3463_s30  ;;  %p3469_p2 = scmp.lt.s32.totalorder %s3463_s30, %s3463_s30 }
 0x226   :  { %v1588_v41 = vadd.f32 %v1548_v10, %v4814_v7  ;;  %v4924_v43 = vadd.f32 %v1811_v53, %v1586_v12 }
 0x227   :  { %v3225_v30 = vpop.f32.mrf.mxu1  ;;  %v3281_v60 = vpop.f32.mrf.mxu0  ;;  %p3470_p3 = por %p3469_p2, %p3468_p1 }
 0x229   :  { %v1553_v52 = vpop.f32.mrf.mxu1  ;;  %v1816_v61 = vpop.f32.mrf.mxu0  ;;  %p3471_p4 = pnand %p3470_p3, %p3464_p0 }
 0x22a   :  { %v1589_v56 = vadd.f32 %v1553_v52, %v4822_v46  ;;  %v4927_v23 = vadd.f32 %v1816_v61, %v1587_v28 }
 0x22b   :  { %v3228_v35 = vpop.f32.mrf.mxu1  ;;  %v3284_v38 = vpop.f32.mrf.mxu0 }
 0x22d   :  { %v1556_v59 = vpop.f32.mrf.mxu1  ;;  %v1819_v48 = vpop.f32.mrf.mxu0 }
 0x22e   :  { %v1590_v37 = vadd.f32 %v1556_v59, %v4837_v18  ;;  %v4930_v22 = vadd.f32 %v1819_v48, %v1588_v41 }
 0x22f   :  { %v3229_v40 = vpop.f32.mrf.mxu1  ;;  %v3285_v7 = vpop.f32.mrf.mxu0 }
 0x231   :  { %v1561_v2 = vpop.f32.mrf.mxu1  ;;  %v1824_v13 = vpop.f32.mrf.mxu0 }
 0x232   :  { %v1591_v39 = vadd.f32 %v1561_v2, %v4841_v5  ;;  %v4933_v58 = vadd.f32 %v1824_v13, %v1589_v56 }
 0x233   :  { %v3232_v17 = vpop.f32.mrf.mxu1  ;;  %v3288_v46 = vpop.f32.mrf.mxu0 }
 0x235   :  { %v1564_v8 = vpop.f32.mrf.mxu1  ;;  %v1827_v24 = vpop.f32.mrf.mxu0 }
 0x236   :  { %v4935_v27 = vadd.f32 %v1827_v24, %v1590_v37 }
 0x237   :  { %v3233_v26 = vpop.f32.mrf.mxu1  ;;  %v3289_v16 = vpop.f32.mrf.mxu0 }
 0x239   :  { %v1832_v6 = vpop.f32.mrf.mxu0  ;;  %v2007_v18 = vpop.f32.mrf.mxu1 }
 0x23a   :  { %v4937_v62 = vadd.f32 %v1832_v6, %v1591_v39  ;;  %v2109_v31 = vadd.f32 %v2007_v18, %v4861_v14 }
 0x23b   :  { %v3292_v25 = vpop.f32.mrf.mxu0  ;;  %v3304_v45 = vpop.f32.mrf.mxu1 }
 0x23d   :  { %v1835_v51 = vpop.f32.mrf.mxu0  ;;  %v2010_v34 = vpop.f32.mrf.mxu1 }
 0x23e   :  { %v2110_v10 = vadd.f32 %v2010_v34, %v4869_v3 }
 0x23f   :  { %v3293_v12 = vpop.f32.mrf.mxu0  ;;  %v3305_v5 = vpop.f32.mrf.mxu1 }
 0x241   :  { %v2015_v20 = vpop.f32.mrf.mxu1  ;;  %v2278_v1 = vpop.f32.mrf.mxu0 }
 0x242   :  { %v2380_v28 = vadd.f32 %v2278_v1, %v2109_v31  ;;  %v2111_v56 = vadd.f32 %v2015_v20, %v4873_v33 }
 0x243   :  { %v3308_v21 = vpop.f32.mrf.mxu1  ;;  %v3364_v63 = vpop.f32.mrf.mxu0 }
 0x244   :  { %v2412_v53 = vadd.f32 %v4943_v15, %v2380_v28 }
 0x245   :  { %v2018_v41 = vpop.f32.mrf.mxu1  ;;  %v2281_v30 = vpop.f32.mrf.mxu0 }
 0x246   :  { %v2437_v60 = vmax.f32 %v2412_v53, 0.0  ;;  %v2381_v52 = vadd.f32 %v2281_v30, %v2110_v10  ;;  %v2112_v3 = vadd.f32 %v2018_v41, %v4876_v47 }
 0x247   :  { %v3309_v61 = vpop.f32.mrf.mxu1  ;;  %v3365_v14 = vpop.f32.mrf.mxu0 }
 0x248   :  { %2462 = vst [vmem:[#allocation2] sm:$0xff] %v2437_v60  ;;  %v2413_v35 = vadd.f32 %v4943_v15, %v2381_v52 }
 0x249   :  { %v2023_v38 = vpop.f32.mrf.mxu1  ;;  %v2286_v59 = vpop.f32.mrf.mxu0 }
 0x24a   :  { %v2438_v48 = vmax.f32 %v2413_v35, 0.0  ;;  %v2382_v37 = vadd.f32 %v2286_v59, %v2111_v56  ;;  %v2113_v24 = vadd.f32 %v2023_v38, %v4879_v4 }
 0x24b   :  { %v3312_v40 = vpop.f32.mrf.mxu1  ;;  %v3368_v7 = vpop.f32.mrf.mxu0 }
 0x24c   :  { %2463 = vst [vmem:[#allocation2 + $0x8] sm:$0xff] %v2438_v48  ;;  %v2414_v2 = vadd.f32 %v4943_v15, %v2382_v37 }
 0x24d   :  { %v2026_v13 = vpop.f32.mrf.mxu1  ;;  %v2289_v39 = vpop.f32.mrf.mxu0 }
 0x24e   :  { %v2439_v17 = vmax.f32 %v2414_v2, 0.0  ;;  %v2383_v46 = vadd.f32 %v2289_v39, %v2112_v3  ;;  %v2114_v51 = vadd.f32 %v2026_v13, %v4882_v42 }
 0x24f   :  { %v3313_v8 = vpop.f32.mrf.mxu1  ;;  %v3369_v33 = vpop.f32.mrf.mxu0 }
 0x250   :  { %2464 = vst [vmem:[#allocation2 + $0x10] sm:$0xff] %v2439_v17  ;;  %v2415_v26 = vadd.f32 %v4943_v15, %v2383_v46 }
 0x251   :  { %v2031_v16 = vpop.f32.mrf.mxu1  ;;  %v2294_v6 = vpop.f32.mrf.mxu0 }
 0x252   :  { %v2440_v18 = vmax.f32 %v2415_v26, 0.0  ;;  %v2384_v25 = vadd.f32 %v2294_v6, %v2113_v24  ;;  %v2115_v28 = vadd.f32 %v2031_v16, %v4885_v0 }
 0x253   :  { %v3316_v45 = vpop.f32.mrf.mxu1  ;;  %v3372_v47 = vpop.f32.mrf.mxu0 }
 0x254   :  { %2465 = vst [vmem:[#allocation2 + $0x18] sm:$0xff] %v2440_v18  ;;  %v2416_v34 = vadd.f32 %v4943_v15, %v2384_v25 }
 0x255   :  { %v2034_v12 = vpop.f32.mrf.mxu1  ;;  %v2297_v5 = vpop.f32.mrf.mxu0 }
 0x256   :  { %v2441_v31 = vmax.f32 %v2416_v34, 0.0  ;;  %v2385_v20 = vadd.f32 %v2297_v5, %v2114_v51  ;;  %v2116_v60 = vadd.f32 %v2034_v12, %v4888_v50 }
 0x257   :  { %v3317_v1 = vpop.f32.mrf.mxu1  ;;  %v3373_v4 = vpop.f32.mrf.mxu0 }
 0x258   :  { %2466 = vst [vmem:[#allocation2 + $0x20] sm:$0xff] %v2441_v31  ;;  %v2417_v21 = vadd.f32 %v4943_v15, %v2385_v20 }
 0x259   :  { %v2039_v63 = vpop.f32.mrf.mxu1  ;;  %v2302_v10 = vpop.f32.mrf.mxu0 }
 0x25a   :  { %v2442_v53 = vmax.f32 %v2417_v21, 0.0  ;;  %v2386_v41 = vadd.f32 %v2302_v10, %v2115_v28  ;;  %v2117_v59 = vadd.f32 %v2039_v63, %v4891_v55 }
 0x25b   :  { %v3320_v30 = vpop.f32.mrf.mxu1  ;;  %v3376_v42 = vpop.f32.mrf.mxu0 }
 0x25c   :  { %2467 = vst [vmem:[#allocation2 + $0x28] sm:$0xff] %v2442_v53  ;;  %v2418_v52 = vadd.f32 %v4943_v15, %v2386_v41 }
 0x25d   :  { %v2042_v61 = vpop.f32.mrf.mxu1  ;;  %v2305_v14 = vpop.f32.mrf.mxu0 }
 0x25e   :  { %v2443_v56 = vmax.f32 %v2418_v52, 0.0  ;;  %v2387_v35 = vadd.f32 %v2305_v14, %v2116_v60  ;;  %v2118_v13 = vadd.f32 %v2042_v61, %v4894_v57 }
 0x25f   :  { %v3321_v38 = vpop.f32.mrf.mxu1  ;;  %v3377_v0 = vpop.f32.mrf.mxu0 }
 0x260   :  { %2468 = vst [vmem:[#allocation2 + $0x30] sm:$0xff] %v2443_v56  ;;  %v2419_v48 = vadd.f32 %v4943_v15, %v2387_v35 }
 0x261   :  { %v2047_v37 = vpop.f32.mrf.mxu1  ;;  %v2310_v40 = vpop.f32.mrf.mxu0 }
 0x262   :  { %v2444_v7 = vmax.f32 %v2419_v48, 0.0  ;;  %v2388_v3 = vadd.f32 %v2310_v40, %v2117_v59  ;;  %v2119_v26 = vadd.f32 %v2047_v37, %v4897_v32 }
 0x263   :  { %v3324_v2 = vpop.f32.mrf.mxu1  ;;  %v3380_v50 = vpop.f32.mrf.mxu0 }
 0x264   :  { %2469 = vst [vmem:[#allocation2 + $0x38] sm:$0xff] %v2444_v7  ;;  %v2420_v39 = vadd.f32 %v4943_v15, %v2388_v3 }
 0x265   :  { %v2050_v17 = vpop.f32.mrf.mxu1  ;;  %v2313_v46 = vpop.f32.mrf.mxu0 }
 0x266   :  { %v2445_v8 = vmax.f32 %v2420_v39, 0.0  ;;  %v2389_v33 = vadd.f32 %v2313_v46, %v2118_v13  ;;  %v2120_v51 = vadd.f32 %v2050_v17, %v4900_v19 }
 0x267   :  { %v3325_v24 = vpop.f32.mrf.mxu1  ;;  %v3381_v55 = vpop.f32.mrf.mxu0 }
 0x268   :  { %2470 = vst [vmem:[#allocation2 + $0x40] sm:$0xff] %v2445_v8  ;;  %v2421_v16 = vadd.f32 %v4943_v15, %v2389_v33 }
 0x269   :  { %v2055_v6 = vpop.f32.mrf.mxu1  ;;  %v2318_v18 = vpop.f32.mrf.mxu0 }
 0x26a   :  { %v2446_v25 = vmax.f32 %v2421_v16, 0.0  ;;  %v2390_v45 = vadd.f32 %v2318_v18, %v2119_v26  ;;  %v2121_v4 = vadd.f32 %v2055_v6, %v4903_v29 }
 0x26b   :  { %v3328_v47 = vpop.f32.mrf.mxu1  ;;  %v3384_v57 = vpop.f32.mrf.mxu0 }
 0x26c   :  { %2471 = vst [vmem:[#allocation2 + $0x48] sm:$0xff] %v2446_v25  ;;  %v2422_v34 = vadd.f32 %v4943_v15, %v2390_v45 }
 0x26d   :  { %v2058_v12 = vpop.f32.mrf.mxu1  ;;  %v2321_v5 = vpop.f32.mrf.mxu0 }
 0x26e   :  { %v2447_v31 = vmax.f32 %v2422_v34, 0.0  ;;  %v2391_v20 = vadd.f32 %v2321_v5, %v2120_v51  ;;  %v2122_v30 = vadd.f32 %v2058_v12, %v4906_v9 }
 0x26f   :  { %v3329_v1 = vpop.f32.mrf.mxu1  ;;  %v3385_v32 = vpop.f32.mrf.mxu0 }
 0x270   :  { %2472 = vst [vmem:[#allocation2 + $0x50] sm:$0xff] %v2447_v31  ;;  %v2423_v28 = vadd.f32 %v4943_v15, %v2391_v20 }
 0x271   :  { %v2063_v21 = vpop.f32.mrf.mxu1  ;;  %v2326_v63 = vpop.f32.mrf.mxu0 }
 0x272   :  { %v2448_v10 = vmax.f32 %v2423_v28, 0.0  ;;  %v2392_v53 = vadd.f32 %v2326_v63, %v2121_v4  ;;  %v2123_v35 = vadd.f32 %v2063_v21, %v4909_v44 }
 0x273   :  { %v3332_v41 = vpop.f32.mrf.mxu1  ;;  %v3388_v19 = vpop.f32.mrf.mxu0 }
 0x274   :  { %2473 = vst [vmem:[#allocation2 + $0x58] sm:$0xff] %v2448_v10  ;;  %v2424_v42 = vadd.f32 %v4943_v15, %v2392_v53 }
 0x275   :  { %v2066_v60 = vpop.f32.mrf.mxu1  ;;  %v2329_v52 = vpop.f32.mrf.mxu0 }
 0x276   :  { %v2449_v61 = vmax.f32 %v2424_v42, 0.0  ;;  %v2393_v14 = vadd.f32 %v2329_v52, %v2122_v30  ;;  %v2124_v7 = vadd.f32 %v2066_v60, %v4912_v36 }
 0x277   :  { %v3333_v56 = vpop.f32.mrf.mxu1  ;;  %v3389_v29 = vpop.f32.mrf.mxu0 }
 0x278   :  { %2474 = vst [vmem:[#allocation2 + $0x60] sm:$0xff] %v2449_v61  ;;  %v2425_v38 = vadd.f32 %v4943_v15, %v2393_v14 }
 0x279   :  { %v2071_v0 = vpop.f32.mrf.mxu1  ;;  %v2334_v59 = vpop.f32.mrf.mxu0 }
 0x27a   :  { %v2450_v48 = vmax.f32 %v2425_v38, 0.0  ;;  %v2394_v37 = vadd.f32 %v2334_v59, %v2123_v35  ;;  %v2125_v46 = vadd.f32 %v2071_v0, %v4915_v11 }
 0x27b   :  { %v3336_v40 = vpop.f32.mrf.mxu1  ;;  %v3392_v9 = vpop.f32.mrf.mxu0 }
 0x27c   :  { %2475 = vst [vmem:[#allocation2 + $0x68] sm:$0xff] %v2450_v48  ;;  %v2426_v3 = vadd.f32 %v4943_v15, %v2394_v37 }
 0x27d   :  { %v2074_v2 = vpop.f32.mrf.mxu1  ;;  %v2337_v50 = vpop.f32.mrf.mxu0 }
 0x27e   :  { %v2451_v13 = vmax.f32 %v2426_v3, 0.0  ;;  %v2395_v39 = vadd.f32 %v2337_v50, %v2124_v7  ;;  %v2126_v6 = vadd.f32 %v2074_v2, %v4918_v54 }
 0x27f   :  { %v3337_v17 = vpop.f32.mrf.mxu1  ;;  %v3393_v44 = vpop.f32.mrf.mxu0 }
 0x280   :  { %2476 = vst [vmem:[#allocation2 + $0x70] sm:$0xff] %v2451_v13  ;;  %v2427_v8 = vadd.f32 %v4943_v15, %v2395_v39 }
 0x281   :  { %v2079_v33 = vpop.f32.mrf.mxu1  ;;  %v2342_v24 = vpop.f32.mrf.mxu0 }
 0x282   :  { %v2452_v55 = vmax.f32 %v2427_v8, 0.0  ;;  %v2396_v26 = vadd.f32 %v2342_v24, %v2125_v46  ;;  %v2127_v34 = vadd.f32 %v2079_v33, %v4921_v49 }
 0x283   :  { %v3340_v16 = vpop.f32.mrf.mxu1  ;;  %v3396_v36 = vpop.f32.mrf.mxu0 }
 0x284   :  { %2477 = vst [vmem:[#allocation2 + $0x78] sm:$0xff] %v2452_v55  ;;  %v2428_v18 = vadd.f32 %v4943_v15, %v2396_v26 }
 0x285   :  { %v2082_v25 = vpop.f32.mrf.mxu1  ;;  %v2345_v45 = vpop.f32.mrf.mxu0 }
 0x286   :  { %v2453_v47 = vmax.f32 %v2428_v18, 0.0  ;;  %v2397_v57 = vadd.f32 %v2345_v45, %v2126_v6  ;;  %v2128_v4 = vadd.f32 %v2082_v25, %v4924_v43 }
 0x287   :  { %v3341_v51 = vpop.f32.mrf.mxu1  ;;  %v3397_v11 = vpop.f32.mrf.mxu0 }
 0x288   :  { %2478 = vst [vmem:[#allocation2 + $0x80] sm:$0xff] %v2453_v47  ;;  %v2429_v12 = vadd.f32 %v4943_v15, %v2397_v57 }
 0x289   :  { %v2087_v5 = vpop.f32.mrf.mxu1  ;;  %v2350_v31 = vpop.f32.mrf.mxu0 }
 0x28a   :  { %v2454_v20 = vmax.f32 %v2429_v12, 0.0  ;;  %v2398_v1 = vadd.f32 %v2350_v31, %v2127_v34  ;;  %v2129_v19 = vadd.f32 %v2087_v5, %v4927_v23 }
 0x28b   :  { %v3344_v32 = vpop.f32.mrf.mxu1  ;;  %v3400_v54 = vpop.f32.mrf.mxu0 }
 0x28c   :  { %2479 = vst [vmem:[#allocation2 + $0x88] sm:$0xff] %v2454_v20  ;;  %v2430_v28 = vadd.f32 %v4943_v15, %v2398_v1 }
 0x28d   :  { %v2090_v21 = vpop.f32.mrf.mxu1  ;;  %v2353_v63 = vpop.f32.mrf.mxu0 }
 0x28e   :  { %v2455_v10 = vmax.f32 %v2430_v28, 0.0  ;;  %v2399_v53 = vadd.f32 %v2353_v63, %v2128_v4  ;;  %v2130_v56 = vadd.f32 %v2090_v21, %v4930_v22 }
 0x28f   :  { %v3345_v41 = vpop.f32.mrf.mxu1  ;;  %v3401_v49 = vpop.f32.mrf.mxu0 }
 0x290   :  { %2480 = vst [vmem:[#allocation2 + $0x90] sm:$0xff] %v2455_v10  ;;  %v2431_v30 = vadd.f32 %v4943_v15, %v2399_v53 }
 0x291   :  { %v2095_v42 = vpop.f32.mrf.mxu1  ;;  %v2358_v60 = vpop.f32.mrf.mxu0 }
 0x292   :  { %v2456_v52 = vmax.f32 %v2431_v30, 0.0  ;;  %v2400_v61 = vadd.f32 %v2358_v60, %v2129_v19  ;;  %v2131_v37 = vadd.f32 %v2095_v42, %v4933_v58 }
 0x293   :  { %v3348_v14 = vpop.f32.mrf.mxu1  ;;  %v3404_v43 = vpop.f32.mrf.mxu0 }
 0x294   :  { %2481 = vst [vmem:[#allocation2 + $0x98] sm:$0xff] %v2456_v52  ;;  %v2432_v29 = vadd.f32 %v4943_v15, %v2400_v61 }
 0x295   :  { %v2098_v35 = vpop.f32.mrf.mxu1  ;;  %v2361_v38 = vpop.f32.mrf.mxu0 }
 0x296   :  { %v2457_v0 = vmax.f32 %v2432_v29, 0.0  ;;  %v2401_v59 = vadd.f32 %v2361_v38, %v2130_v56  ;;  %v2132_v13 = vadd.f32 %v2098_v35, %v4935_v27 }
 0x297   :  { %v3349_v48 = vpop.f32.mrf.mxu1  ;;  %v3405_v23 = vpop.f32.mrf.mxu0 }
 0x298   :  { %2482 = vst [vmem:[#allocation2 + $0xa0] sm:$0xff] %v2457_v0  ;;  %v2433_v40 = vadd.f32 %v4943_v15, %v2401_v59 }
 0x299   :  { %v2103_v9 = vpop.f32.mrf.mxu1  ;;  %v2366_v7 = vpop.f32.mrf.mxu0 }
 0x29a   :  { %v2458_v3 = vmax.f32 %v2433_v40, 0.0  ;;  %v2402_v2 = vadd.f32 %v2366_v7, %v2131_v37  ;;  %v2133_v24 = vadd.f32 %v2103_v9, %v4937_v62 }
 0x29b   :  { %v3408_v50 = vpop.f32.mrf.mxu0  ;;  %v3352_v22 = vpop.f32.mrf.mxu1 }
 0x29c   :  { %2483 = vst [vmem:[#allocation2 + $0xa8] sm:$0xff] %v2458_v3  ;;  %v2434_v39 = vadd.f32 %v4943_v15, %v2402_v2 }
 0x29d   :  { %v2369_v17 = vpop.f32.mrf.mxu0  ;;  %v2106_v44 = vpop.f32.mrf.mxu1 }
 0x29e   :  { %v2459_v46 = vmax.f32 %v2434_v39, 0.0  ;;  %v2403_v8 = vadd.f32 %v2369_v17, %v2132_v13 }
 0x29f   :  { %v3409_v33 = vpop.f32.mrf.mxu0  ;;  %v3353_v58 = vpop.f32.mrf.mxu1 }
 0x2a0   :  { %2484 = vst [vmem:[#allocation2 + $0xb0] sm:$0xff] %v2459_v46  ;;  %v2435_v55 = vadd.f32 %v4943_v15, %v2403_v8 }
 0x2a1   :  { %v2374_v26 = vpop.f32.mrf.mxu0 }
 0x2a2   :  { %v2460_v16 = vmax.f32 %v2435_v55, 0.0  ;;  %v2404_v36 = vadd.f32 %v2374_v26, %v2133_v24 }
 0x2a3   :  { %v3412_v27 = vpop.f32.mrf.mxu0 }
 0x2a4   :  { %2485 = vst [vmem:[#allocation2 + $0xb8] sm:$0xff] %v2460_v16  ;;  %v2436_v6 = vadd.f32 %v4943_v15, %v2404_v36 }
 0x2a5   :  { %v2377_v18 = vpop.f32.mrf.mxu0 }
 0x2a6   :  { %v2461_v25 = vmax.f32 %v2436_v6, 0.0 }
 0x2a7   :  { %v3413_v45 = vpop.f32.mrf.mxu0 }
 0x2a8   :  { %2486 = vst [vmem:[#allocation2 + $0xc0] sm:$0xff] %v2461_v25 }
 0x2a9   :  { %3474 = shalt.err (!%p3471_p4)
}
 0x2aa   :  { %s3488_s4 = smov 128   ;;  %s3489_s1 = smov 8  }
 0x2ab   :  { %2498 = dma.vmem_to_hbm [thread:$0]  %s2493_s29, 3200, %s5000_s3, [#allocation3], %s3488_s4, %s3488_s4, %s3489_s1  }
 0x2ac   :  { %3483 = dma.done.wait [#allocation3], 3200  }
 0x2ad   :  { %3484 = vsyncadd [#allocation3], 4294964096 }
 0x2ae   :  { %2502 = vsyncpa [#allocation3], 1 }

</bundles_post_ra>
